<compile_context>
chip_gen: v5e
topology: v5e:2x2
jax: 0.10.0
libtpu: 0.0.40
codegen_flags: <defaults>
</compile_context>

<pallas_src>
import functools

import jax
import jax.numpy as jnp
from jax.experimental import pallas as pl
from jax.experimental.pallas import tpu as pltpu

BN_EPS = 1e-5


def _round_up(x, m):
    return (x + m - 1) // m * m


def _vmem_capacity_bytes():
    try:
        return int(pltpu.get_tpu_info().vmem_capacity_bytes)
    except Exception:
        return 64 * 1024 * 1024  # v7x per-TC physical; safe lower bound everywhere


_VMEM_CAP = _vmem_capacity_bytes()
_VMEM_LIMIT = min(_VMEM_CAP // 2, 64 * 1024 * 1024)   # 32 MiB on v7x, 64 MiB v5e/v6e
_TILE_BUDGET = _VMEM_LIMIT // 2                        # for the double-buffered tiles


def _pick_tile_m(m, kp, cp, in_bytes=2, y_bytes=2):
    """Rows per tile: biggest that fits the per-generation VMEM budget, but
    small enough that the grid has ~8+ steps so the DMA pipeline overlaps."""
    per_row = 2 * (kp * in_bytes + cp * y_bytes)       # double-buffered in + out
    tm = _TILE_BUDGET // max(per_row, 1)
    tm = (tm // 256) * 256
    tm = max(256, min(2048, tm))
    tm = min(tm, max(256, _round_up(-(-m // 8), 256)))
    return tm


# ----------------------------- Pallas kernels --------------------------------

def _conv_stats_kernel(p_ref, w_ref, y_ref, stats_ref):
    """Pass 1: y = P_tile @ W (bf16 in, f32 acc); store y; accumulate per-channel
    sum / sum-of-squares into the group's resident (8, Cp) stats block."""
    @pl.when(pl.program_id(1) == 0)
    def _():
        stats_ref[...] = jnp.zeros_like(stats_ref)

    y = jnp.dot(p_ref[...], w_ref[...], preferred_element_type=jnp.float32)
    y_ref[...] = y.astype(y_ref.dtype)

    s = jnp.sum(y, axis=0, keepdims=True)          # (1, Cp)
    ssq = jnp.sum(y * y, axis=0, keepdims=True)    # (1, Cp)
    # Build a full (8, Cp) update (row 0 = sum, row 1 = sumsq) so the store is a
    # single unmasked full-block "+=" instead of two sublane-masked row writes.
    rows = jax.lax.broadcasted_iota(jnp.int32, (stats_ref.shape[0], 1), 0)
    upd = jnp.where(rows == 0, s, 0.0) + jnp.where(rows == 1, ssq, 0.0)
    stats_ref[...] += upd


def _bn_relu_kernel(y_ref, scale_ref, shift_ref, o_ref):
    """Pass 2: elementwise folded-BN affine + ReLU on the cached conv result."""
    y = y_ref[...].astype(jnp.float32)
    o_ref[...] = jnp.maximum(y * scale_ref[...] + shift_ref[...], 0.0).astype(o_ref.dtype)


# ------------------------------- im2col --------------------------------------

def _im2col_3d_ndhwc(x, kernel_size, stride, padding):
    """x: (N, D, H, W, C) channel-last -> patches (M, kD*kH*kW*C), output dims.

    Channel-last makes each patch row a contiguous, lane-dense read of C.
    K ordering is (kz, ky, kx, c) and must match the weight reshape below.
    """
    n, d, h, w, c = x.shape
    kd, kh, kw = kernel_size
    sd, sh, sw = stride
    pd, ph, pw = padding

    xp = jnp.pad(x, ((0, 0), (pd, pd), (ph, ph), (pw, pw), (0, 0)))
    do = (d + 2 * pd - kd) // sd + 1
    ho = (h + 2 * ph - kh) // sh + 1
    wo = (w + 2 * pw - kw) // sw + 1

    slabs = []
    for kz in range(kd):
        for ky in range(kh):
            for kx in range(kw):
                slab = jax.lax.slice(
                    xp,
                    (0, kz, ky, kx, 0),
                    (n, kz + (do - 1) * sd + 1, ky + (ho - 1) * sh + 1,
                     kx + (wo - 1) * sw + 1, c),
                    (1, sd, sh, sw, 1),
                )  # (N, Do, Ho, Wo, C)
                slabs.append(slab)
    pat = jnp.stack(slabs, axis=4)                  # (N, Do, Ho, Wo, kk, C)
    m = n * do * ho * wo
    k = c * kd * kh * kw
    return pat.reshape(m, k), (do, ho, wo)


# ------------------------------- wrapper --------------------------------------

def conv_unit_forward(x, weight, bias, gamma, beta, *, stride, padding,
                      out_dtype=jnp.float32):
    """Conv_Unit forward, channel-last.

    x: (N, D, H, W, C_in);  weight: (C_out, C_in, kD, kH, kW) (PyTorch layout).
    Returns (N, Do, Ho, Wo, C_out) in out_dtype (bf16 recommended when chaining).
    """
    del bias  # conv bias cancels exactly in training-mode BatchNorm.

    n = x.shape[0]
    c_out = weight.shape[0]
    k_sz = weight.shape[2:]

    patches, (do, ho, wo) = _im2col_3d_ndhwc(x, k_sz, stride, padding)
    m, k = patches.shape

    # K padded only to a small multiple (full-K block is legal); C_out padded to
    # 128 so output stores are lane-dense unmasked vst.
    kp = _round_up(k, 32)
    cp = _round_up(c_out, 128)

    tm = _pick_tile_m(m, kp, cp)
    num_blocks = -(-m // tm)
    groups = 2 if num_blocks >= 2 else 1     # shard pass-1 across v7x's 2 TCs
    mp = _round_up(m, tm * groups)
    steps = mp // (tm * groups)

    bf16, f32 = jnp.bfloat16, jnp.float32
    patches_p = jnp.pad(patches, ((0, mp - m), (0, kp - k))).astype(bf16)
    # (C_out, C_in, kD, kH, kW) -> (kD, kH, kW, C_in, C_out) -> (K, C_out):
    # row index = ((kz*kH + ky)*kW + kx)*C_in + c  -- matches im2col ordering.
    w_mat = jnp.transpose(weight, (2, 3, 4, 1, 0)).reshape(k, c_out)
    w_mat = jnp.pad(w_mat, ((0, kp - k), (0, cp - c_out))).astype(bf16)
    gamma_p = jnp.pad(gamma.astype(f32), (0, cp - c_out))
    beta_p = jnp.pad(beta.astype(f32), (0, cp - c_out))

    # ---- pass 1: conv matmul + per-channel sum / sum-of-squares ------------
    y_flat, stats = pl.pallas_call(
        _conv_stats_kernel,
        out_shape=(jax.ShapeDtypeStruct((mp, cp), bf16),
                   jax.ShapeDtypeStruct((8 * groups, cp), f32)),
        grid=(groups, steps),
        in_specs=[
            pl.BlockSpec((tm, kp), lambda g, i: (g * steps + i, 0)),
            pl.BlockSpec((kp, cp), lambda g, i: (0, 0)),
        ],
        out_specs=(
            pl.BlockSpec((tm, cp), lambda g, i: (g * steps + i, 0)),
            pl.BlockSpec((8, cp), lambda g, i: (g, 0)),
        ),
        compiler_params=pltpu.CompilerParams(
            dimension_semantics=("parallel", "arbitrary"),
            vmem_limit_bytes=_VMEM_LIMIT),
        cost_estimate=pl.CostEstimate(
            flops=2 * mp * kp * cp,
            transcendentals=0,
            bytes_accessed=2 * (mp * kp + kp * cp + mp * cp) + 4 * 8 * groups * cp),
    )(patches_p, w_mat)

    # Finalize GLOBAL BN statistics (tiny C-sized math) and fold BatchNorm into
    # a single scale/shift pair.  Zero-padded M rows contribute nothing to the
    # sums, so dividing by the true m keeps the statistics exact.
    st = stats.reshape(groups, 8, cp).sum(axis=0)
    mean = st[0] / m
    var = jnp.maximum(st[1] / m - mean * mean, 0.0)   # biased var, as PyTorch BN
    inv_std = jax.lax.rsqrt(var + BN_EPS)
    scale = (gamma_p * inv_std).reshape(1, cp)
    shift = (beta_p - mean * gamma_p * inv_std).reshape(1, cp)

    out_bytes = jnp.dtype(out_dtype).itemsize

    # ---- pass 2: elementwise folded BN + ReLU on cached y -------------------
    out_flat = pl.pallas_call(
        _bn_relu_kernel,
        out_shape=jax.ShapeDtypeStruct((mp, cp), out_dtype),
        grid=(mp // tm,),
        in_specs=[
            pl.BlockSpec((tm, cp), lambda i: (i, 0)),
            pl.BlockSpec((1, cp), lambda i: (0, 0)),
            pl.BlockSpec((1, cp), lambda i: (0, 0)),
        ],
        out_specs=pl.BlockSpec((tm, cp), lambda i: (i, 0)),
        compiler_params=pltpu.CompilerParams(
            dimension_semantics=("parallel",),
            vmem_limit_bytes=_VMEM_LIMIT),
        cost_estimate=pl.CostEstimate(
            flops=2 * mp * cp,
            transcendentals=0,
            bytes_accessed=2 * mp * cp + out_bytes * mp * cp + 8 * cp),
    )(y_flat, scale, shift)

    # (M, C_out) -> (N, Do, Ho, Wo, C_out): stays channel-last for the next layer.
    return out_flat[:m, :c_out].reshape(n, do, ho, wo, c_out)


# ------------------------------ reference -------------------------------------

def _reference(x, weight, bias, gamma, beta, *, stride, padding):
    """Plain-JAX Conv3d + training-mode BatchNorm3d + ReLU, NCDHW, f32."""
    y = jax.lax.conv_general_dilated(
        x, weight, window_strides=stride,
        padding=[(p, p) for p in padding],
        dimension_numbers=("NCDHW", "OIDHW", "NCDHW"))
    y = y + bias.reshape(1, -1, 1, 1, 1)
    mean = jnp.mean(y, axis=(0, 2, 3, 4), keepdims=True)
    var = jnp.mean((y - mean) ** 2, axis=(0, 2, 3, 4), keepdims=True)
    y = (y - mean) * jax.lax.rsqrt(var + BN_EPS)
    y = y * gamma.reshape(1, -1, 1, 1, 1) + beta.reshape(1, -1, 1, 1, 1)
    return jnp.maximum(y, 0.0)


if __name__ == "__main__":
    # AFFNet stem at small spatial size: conv_1_1 (1 -> 16) then conv_1_2
    # (16 -> 16), kernel 3, stride 1, padding 1; input (N=2, C=1, D=H=W=8).
    stride, pad = (1, 1, 1), (1, 1, 1)

    key = jax.random.PRNGKey(0)
    ks = jax.random.split(key, 9)
    x = jax.random.normal(ks[0], (2, 1, 8, 8, 8), dtype=jnp.float32)   # NCDHW

    w1 = jax.random.normal(ks[1], (16, 1, 3, 3, 3), dtype=jnp.float32) * 0.2
    b1 = jax.random.normal(ks[2], (16,), dtype=jnp.float32) * 0.1
    g1 = 1.0 + 0.1 * jax.random.normal(ks[3], (16,), dtype=jnp.float32)
    be1 = 0.1 * jax.random.normal(ks[4], (16,), dtype=jnp.float32)

    w2 = jax.random.normal(ks[5], (16, 16, 3, 3, 3), dtype=jnp.float32) * 0.1
    b2 = jax.random.normal(ks[6], (16,), dtype=jnp.float32) * 0.1
    g2 = 1.0 + 0.1 * jax.random.normal(ks[7], (16,), dtype=jnp.float32)
    be2 = 0.1 * jax.random.normal(ks[8], (16,), dtype=jnp.float32)

    @jax.jit
    def affnet_stem(x_ndhwc, w1, b1, g1, be1, w2, b2, g2, be2):
        # Chained Conv_Units stay channel-last; inter-layer activation in bf16.
        h = conv_unit_forward(x_ndhwc, w1, b1, g1, be1, stride=stride,
                              padding=pad, out_dtype=jnp.bfloat16)
        o = conv_unit_forward(h, w2, b2, g2, be2, stride=stride,
                              padding=pad, out_dtype=jnp.float32)
        return h, o

    x_ndhwc = jnp.transpose(x, (0, 2, 3, 4, 1))          # NCDHW -> NDHWC (once)
    out1_cl, out2_cl = affnet_stem(x_ndhwc, w1, b1, g1, be1, w2, b2, g2, be2)
    jax.block_until_ready(out2_cl)

    # Test glue: back to NCDHW / f32 for comparison against the reference.
    out1 = jnp.transpose(out1_cl.astype(jnp.float32), (0, 4, 1, 2, 3))
    out2 = jnp.transpose(out2_cl, (0, 4, 1, 2, 3))

    ref1 = _reference(x, w1, b1, g1, be1, stride=stride, padding=pad)
    ref2 = _reference(ref1, w2, b2, g2, be2, stride=stride, padding=pad)

    assert out1.shape == ref1.shape == (2, 16, 8, 8, 8)
    assert out2.shape == ref2.shape == (2, 16, 8, 8, 8)
    # Tolerance accounts for the bf16 matmul inputs, bf16 cached conv result and
    # bf16 inter-layer activation (reference path is pure f32).
    assert jnp.allclose(out1, ref1, rtol=5e-2, atol=5e-2), "conv_1_1 mismatch"
    assert jnp.allclose(out2, ref2, rtol=5e-2, atol=5e-2), "conv_1_2 mismatch"

    print("KERNEL_OK")
</pallas_src>

<mosaic_0001>
module attributes {stable_mosaic.version = 11 : i64} {
  func.func @_conv_stats_kernel(%arg0: i32, %arg1: i32, %arg2: memref<256x32xbf16, #tpu.memory_space<vmem>>, %arg3: memref<32x128xbf16, #tpu.memory_space<vmem>>, %arg4: memref<256x128xbf16, #tpu.memory_space<vmem>>, %arg5: memref<8x128xf32, #tpu.memory_space<vmem>>) attributes {dimension_semantics = [#tpu.dimension_semantics<parallel>, #tpu.dimension_semantics<arbitrary>], iteration_bounds = array<i64: 2, 2>, scalar_prefetch = 0 : i64, scratch_operands = 0 : i64, tpu.core_type = #tpu.core_type<tc>, window_params = [{transform_indices = @transform_0, window_bounds = array<i64: 256, 32>}, {pipeline_mode = #tpu.pipeline_mode<synchronous>, transform_indices = @transform_1, window_bounds = array<i64: 32, 128>}, {transform_indices = @transform_2, window_bounds = array<i64: 256, 128>}, {transform_indices = @transform_3, window_bounds = array<i64: 8, 128>}]} {
    %c0_i32 = arith.constant 0 : i32
    %0 = arith.cmpi eq, %arg1, %c0_i32 : i32
    %1 = arith.extui %0 : i1 to i32
    %c0_i32_0 = arith.constant 0 : i32
    %2 = arith.cmpi ne, %1, %c0_i32_0 : i32
    scf.if %2 {
      %cst_15 = arith.constant 0.000000e+00 : f32
      %34 = vector.broadcast %cst_15 : f32 to vector<8x128xf32>
      %c0_16 = arith.constant 0 : index
      %c0_17 = arith.constant 0 : index
      %35 = vector.load %arg5[%c0_16, %c0_17] : memref<8x128xf32, #tpu.memory_space<vmem>>, vector<8x128xf32>
      tpu.vector_store %arg5[%c0_16, %c0_17], %34 {strides = array<i32>} : memref<8x128xf32, #tpu.memory_space<vmem>>, vector<8x128xf32>,
    } else {
    }
    %c0 = arith.constant 0 : index
    %c0_1 = arith.constant 0 : index
    %3 = vector.load %arg2[%c0, %c0_1] : memref<256x32xbf16, #tpu.memory_space<vmem>>, vector<256x32xbf16>
    %c0_2 = arith.constant 0 : index
    %c0_3 = arith.constant 0 : index
    %4 = vector.load %arg3[%c0_2, %c0_3] : memref<32x128xbf16, #tpu.memory_space<vmem>>, vector<32x128xbf16>
    %cst = arith.constant dense<0.000000e+00> : vector<256x128xf32>
    %5 = tpu.matmul %3, %4, %cst {dimension_numbers = #tpu.dot_dimension_numbers<[1], [0], [0], [1], [0, 0, 1, 1], [], []>} : vector<256x32xbf16>, vector<32x128xbf16>, vector<256x128xf32> -> vector<256x128xf32>
    %6 = arith.truncf %5 : vector<256x128xf32> to vector<256x128xbf16>
    %c0_4 = arith.constant 0 : index
    %c0_5 = arith.constant 0 : index
    %7 = vector.load %arg4[%c0_4, %c0_5] : memref<256x128xbf16, #tpu.memory_space<vmem>>, vector<256x128xbf16>
    tpu.vector_store %arg4[%c0_4, %c0_5], %6 {strides = array<i32>} : memref<256x128xbf16, #tpu.memory_space<vmem>>, vector<256x128xbf16>,
    %cst_6 = arith.constant dense<0.000000e+00> : vector<128xf32>
    %8 = vector.multi_reduction <add>, %5, %cst_6 [0] : vector<256x128xf32> to vector<128xf32>
    %9 = vector.shape_cast %8 : vector<128xf32> to vector<1x128xf32>
    %10 = arith.mulf %5, %5 : vector<256x128xf32>
    %cst_7 = arith.constant dense<0.000000e+00> : vector<128xf32>
    %11 = vector.multi_reduction <add>, %10, %cst_7 [0] : vector<256x128xf32> to vector<128xf32>
    %12 = vector.shape_cast %11 : vector<128xf32> to vector<1x128xf32>
    %13 = tpu.iota {dimensions = array<i32: 0>} : vector<8x1xi32>
    %c0_i32_8 = arith.constant 0 : i32
    %14 = vector.broadcast %c0_i32_8 : i32 to vector<8x1xi32>
    %15 = arith.cmpi eq, %13, %14 : vector<8x1xi32>
    %cst_9 = arith.constant 0.000000e+00 : f32
    %16 = vector.shape_cast %15 : vector<8x1xi1> to vector<8x1xi1>
    %17 = vector.broadcast %16 : vector<8x1xi1> to vector<8x128xi1>
    %18 = vector.shape_cast %9 : vector<1x128xf32> to vector<1x128xf32>
    %19 = vector.broadcast %18 : vector<1x128xf32> to vector<8x128xf32>
    %20 = vector.broadcast %cst_9 : f32 to vector<8x128xf32>
    %21 = arith.select %17, %19, %20 : vector<8x128xi1>, vector<8x128xf32>
    %c1_i32 = arith.constant 1 : i32
    %22 = vector.broadcast %c1_i32 : i32 to vector<8x1xi32>
    %23 = arith.cmpi eq, %13, %22 : vector<8x1xi32>
    %cst_10 = arith.constant 0.000000e+00 : f32
    %24 = vector.shape_cast %23 : vector<8x1xi1> to vector<8x1xi1>
    %25 = vector.broadcast %24 : vector<8x1xi1> to vector<8x128xi1>
    %26 = vector.shape_cast %12 : vector<1x128xf32> to vector<1x128xf32>
    %27 = vector.broadcast %26 : vector<1x128xf32> to vector<8x128xf32>
    %28 = vector.broadcast %cst_10 : f32 to vector<8x128xf32>
    %29 = arith.select %25, %27, %28 : vector<8x128xi1>, vector<8x128xf32>
    %30 = arith.addf %21, %29 : vector<8x128xf32>
    %c0_11 = arith.constant 0 : index
    %c0_12 = arith.constant 0 : index
    %31 = vector.load %arg5[%c0_11, %c0_12] : memref<8x128xf32, #tpu.memory_space<vmem>>, vector<8x128xf32>
    %32 = arith.addf %31, %30 : vector<8x128xf32>
    %c0_13 = arith.constant 0 : index
    %c0_14 = arith.constant 0 : index
    %33 = vector.load %arg5[%c0_13, %c0_14] : memref<8x128xf32, #tpu.memory_space<vmem>>, vector<8x128xf32>
    tpu.vector_store %arg5[%c0_13, %c0_14], %32 {strides = array<i32>} : memref<8x128xf32, #tpu.memory_space<vmem>>, vector<8x128xf32>,
    return
  }
  func.func @transform_0(%arg0: i32, %arg1: i32) -> (i32, i32) {
    %c2_i32 = arith.constant 2 : i32
    %0 = arith.muli %arg0, %c2_i32 : i32
    %1 = arith.addi %0, %arg1 : i32
    %c0_i32 = arith.constant 0 : i32
    %c0_i32_0 = arith.constant 0 : i32
    return %1, %c0_i32 : i32, i32
  }
  func.func @transform_1(%arg0: i32, %arg1: i32) -> (i32, i32) {
    %c0_i32 = arith.constant 0 : i32
    %c0_i32_0 = arith.constant 0 : i32
    %c0_i32_1 = arith.constant 0 : i32
    return %c0_i32, %c0_i32_0 : i32, i32
  }
  func.func @transform_2(%arg0: i32, %arg1: i32) -> (i32, i32) {
    %c2_i32 = arith.constant 2 : i32
    %0 = arith.muli %arg0, %c2_i32 : i32
    %1 = arith.addi %0, %arg1 : i32
    %c0_i32 = arith.constant 0 : i32
    %c0_i32_0 = arith.constant 0 : i32
    return %1, %c0_i32 : i32, i32
  }
  func.func @transform_3(%arg0: i32, %arg1: i32) -> (i32, i32) {
    %c0_i32 = arith.constant 0 : i32
    %c0_i32_0 = arith.constant 0 : i32
    return %arg0, %c0_i32 : i32, i32
  }
}

module attributes {stable_mosaic.version = 11 : i64} {
  func.func @_bn_relu_kernel(%arg0: i32, %arg1: memref<256x128xbf16, #tpu.memory_space<vmem>>, %arg2: memref<1x128xf32, #tpu.memory_space<vmem>>, %arg3: memref<1x128xf32, #tpu.memory_space<vmem>>, %arg4: memref<256x128xbf16, #tpu.memory_space<vmem>>) attributes {dimension_semantics = [#tpu.dimension_semantics<parallel>], iteration_bounds = array<i64: 4>, scalar_prefetch = 0 : i64, scratch_operands = 0 : i64, tpu.core_type = #tpu.core_type<tc>, window_params = [{transform_indices = @transform_0, window_bounds = array<i64: 256, 128>}, {pipeline_mode = #tpu.pipeline_mode<synchronous>, transform_indices = @transform_1, window_bounds = array<i64: 1, 128>}, {pipeline_mode = #tpu.pipeline_mode<synchronous>, transform_indices = @transform_2, window_bounds = array<i64: 1, 128>}, {transform_indices = @transform_3, window_bounds = array<i64: 256, 128>}]} {
    %c0 = arith.constant 0 : index
    %c0_0 = arith.constant 0 : index
    %0 = vector.load %arg1[%c0, %c0_0] : memref<256x128xbf16, #tpu.memory_space<vmem>>, vector<256x128xbf16>
    %1 = arith.extf %0 : vector<256x128xbf16> to vector<256x128xf32>
    %c0_1 = arith.constant 0 : index
    %c0_2 = arith.constant 0 : index
    %2 = vector.load %arg2[%c0_1, %c0_2] : memref<1x128xf32, #tpu.memory_space<vmem>>, vector<1x128xf32>
    %3 = vector.broadcast %2 : vector<1x128xf32> to vector<256x128xf32>
    %4 = arith.mulf %1, %3 : vector<256x128xf32>
    %c0_3 = arith.constant 0 : index
    %c0_4 = arith.constant 0 : index
    %5 = vector.load %arg3[%c0_3, %c0_4] : memref<1x128xf32, #tpu.memory_space<vmem>>, vector<1x128xf32>
    %6 = vector.broadcast %5 : vector<1x128xf32> to vector<256x128xf32>
    %7 = arith.addf %4, %6 : vector<256x128xf32>
    %cst = arith.constant 0.000000e+00 : f32
    %8 = vector.broadcast %cst : f32 to vector<256x128xf32>
    %9 = arith.maximumf %7, %8 : vector<256x128xf32>
    %10 = arith.truncf %9 : vector<256x128xf32> to vector<256x128xbf16>
    %c0_5 = arith.constant 0 : index
    %c0_6 = arith.constant 0 : index
    %11 = vector.load %arg4[%c0_5, %c0_6] : memref<256x128xbf16, #tpu.memory_space<vmem>>, vector<256x128xbf16>
    tpu.vector_store %arg4[%c0_5, %c0_6], %10 {strides = array<i32>} : memref<256x128xbf16, #tpu.memory_space<vmem>>, vector<256x128xbf16>,
    return
  }
  func.func @transform_0(%arg0: i32) -> (i32, i32) {
    %c0_i32 = arith.constant 0 : i32
    %c0_i32_0 = arith.constant 0 : i32
    return %arg0, %c0_i32 : i32, i32
  }
  func.func @transform_1(%arg0: i32) -> (i32, i32) {
    %c0_i32 = arith.constant 0 : i32
    %c0_i32_0 = arith.constant 0 : i32
    %c0_i32_1 = arith.constant 0 : i32
    return %c0_i32, %c0_i32_0 : i32, i32
  }
  func.func @transform_2(%arg0: i32) -> (i32, i32) {
    %c0_i32 = arith.constant 0 : i32
    %c0_i32_0 = arith.constant 0 : i32
    %c0_i32_1 = arith.constant 0 : i32
    return %c0_i32, %c0_i32_0 : i32, i32
  }
  func.func @transform_3(%arg0: i32) -> (i32, i32) {
    %c0_i32 = arith.constant 0 : i32
    %c0_i32_0 = arith.constant 0 : i32
    return %arg0, %c0_i32 : i32, i32
  }
}

module attributes {stable_mosaic.version = 11 : i64} {
  func.func @_conv_stats_kernel(%arg0: i32, %arg1: i32, %arg2: memref<256x448xbf16, #tpu.memory_space<vmem>>, %arg3: memref<448x128xbf16, #tpu.memory_space<vmem>>, %arg4: memref<256x128xbf16, #tpu.memory_space<vmem>>, %arg5: memref<8x128xf32, #tpu.memory_space<vmem>>) attributes {dimension_semantics = [#tpu.dimension_semantics<parallel>, #tpu.dimension_semantics<arbitrary>], iteration_bounds = array<i64: 2, 2>, scalar_prefetch = 0 : i64, scratch_operands = 0 : i64, tpu.core_type = #tpu.core_type<tc>, window_params = [{transform_indices = @transform_0, window_bounds = array<i64: 256, 448>}, {pipeline_mode = #tpu.pipeline_mode<synchronous>, transform_indices = @transform_1, window_bounds = array<i64: 448, 128>}, {transform_indices = @transform_2, window_bounds = array<i64: 256, 128>}, {transform_indices = @transform_3, window_bounds = array<i64: 8, 128>}]} {
    %c0_i32 = arith.constant 0 : i32
    %0 = arith.cmpi eq, %arg1, %c0_i32 : i32
    %1 = arith.extui %0 : i1 to i32
    %c0_i32_0 = arith.constant 0 : i32
    %2 = arith.cmpi ne, %1, %c0_i32_0 : i32
    scf.if %2 {
      %cst_15 = arith.constant 0.000000e+00 : f32
      %34 = vector.broadcast %cst_15 : f32 to vector<8x128xf32>
      %c0_16 = arith.constant 0 : index
      %c0_17 = arith.constant 0 : index
      %35 = vector.load %arg5[%c0_16, %c0_17] : memref<8x128xf32, #tpu.memory_space<vmem>>, vector<8x128xf32>
      tpu.vector_store %arg5[%c0_16, %c0_17], %34 {strides = array<i32>} : memref<8x128xf32, #tpu.memory_space<vmem>>, vector<8x128xf32>,
    } else {
    }
    %c0 = arith.constant 0 : index
    %c0_1 = arith.constant 0 : index
    %3 = vector.load %arg2[%c0, %c0_1] : memref<256x448xbf16, #tpu.memory_space<vmem>>, vector<256x448xbf16>
    %c0_2 = arith.constant 0 : index
    %c0_3 = arith.constant 0 : index
    %4 = vector.load %arg3[%c0_2, %c0_3] : memref<448x128xbf16, #tpu.memory_space<vmem>>, vector<448x128xbf16>
    %cst = arith.constant dense<0.000000e+00> : vector<256x128xf32>
    %5 = tpu.matmul %3, %4, %cst {dimension_numbers = #tpu.dot_dimension_numbers<[1], [0], [0], [1], [0, 0, 1, 1], [], []>} : vector<256x448xbf16>, vector<448x128xbf16>, vector<256x128xf32> -> vector<256x128xf32>
    %6 = arith.truncf %5 : vector<256x128xf32> to vector<256x128xbf16>
    %c0_4 = arith.constant 0 : index
    %c0_5 = arith.constant 0 : index
    %7 = vector.load %arg4[%c0_4, %c0_5] : memref<256x128xbf16, #tpu.memory_space<vmem>>, vector<256x128xbf16>
    tpu.vector_store %arg4[%c0_4, %c0_5], %6 {strides = array<i32>} : memref<256x128xbf16, #tpu.memory_space<vmem>>, vector<256x128xbf16>,
    %cst_6 = arith.constant dense<0.000000e+00> : vector<128xf32>
    %8 = vector.multi_reduction <add>, %5, %cst_6 [0] : vector<256x128xf32> to vector<128xf32>
    %9 = vector.shape_cast %8 : vector<128xf32> to vector<1x128xf32>
    %10 = arith.mulf %5, %5 : vector<256x128xf32>
    %cst_7 = arith.constant dense<0.000000e+00> : vector<128xf32>
    %11 = vector.multi_reduction <add>, %10, %cst_7 [0] : vector<256x128xf32> to vector<128xf32>
    %12 = vector.shape_cast %11 : vector<128xf32> to vector<1x128xf32>
    %13 = tpu.iota {dimensions = array<i32: 0>} : vector<8x1xi32>
    %c0_i32_8 = arith.constant 0 : i32
    %14 = vector.broadcast %c0_i32_8 : i32 to vector<8x1xi32>
    %15 = arith.cmpi eq, %13, %14 : vector<8x1xi32>
    %cst_9 = arith.constant 0.000000e+00 : f32
    %16 = vector.shape_cast %15 : vector<8x1xi1> to vector<8x1xi1>
    %17 = vector.broadcast %16 : vector<8x1xi1> to vector<8x128xi1>
    %18 = vector.shape_cast %9 : vector<1x128xf32> to vector<1x128xf32>
    %19 = vector.broadcast %18 : vector<1x128xf32> to vector<8x128xf32>
    %20 = vector.broadcast %cst_9 : f32 to vector<8x128xf32>
    %21 = arith.select %17, %19, %20 : vector<8x128xi1>, vector<8x128xf32>
    %c1_i32 = arith.constant 1 : i32
    %22 = vector.broadcast %c1_i32 : i32 to vector<8x1xi32>
    %23 = arith.cmpi eq, %13, %22 : vector<8x1xi32>
    %cst_10 = arith.constant 0.000000e+00 : f32
    %24 = vector.shape_cast %23 : vector<8x1xi1> to vector<8x1xi1>
    %25 = vector.broadcast %24 : vector<8x1xi1> to vector<8x128xi1>
    %26 = vector.shape_cast %12 : vector<1x128xf32> to vector<1x128xf32>
    %27 = vector.broadcast %26 : vector<1x128xf32> to vector<8x128xf32>
    %28 = vector.broadcast %cst_10 : f32 to vector<8x128xf32>
    %29 = arith.select %25, %27, %28 : vector<8x128xi1>, vector<8x128xf32>
    %30 = arith.addf %21, %29 : vector<8x128xf32>
    %c0_11 = arith.constant 0 : index
    %c0_12 = arith.constant 0 : index
    %31 = vector.load %arg5[%c0_11, %c0_12] : memref<8x128xf32, #tpu.memory_space<vmem>>, vector<8x128xf32>
    %32 = arith.addf %31, %30 : vector<8x128xf32>
    %c0_13 = arith.constant 0 : index
    %c0_14 = arith.constant 0 : index
    %33 = vector.load %arg5[%c0_13, %c0_14] : memref<8x128xf32, #tpu.memory_space<vmem>>, vector<8x128xf32>
    tpu.vector_store %arg5[%c0_13, %c0_14], %32 {strides = array<i32>} : memref<8x128xf32, #tpu.memory_space<vmem>>, vector<8x128xf32>,
    return
  }
  func.func @transform_0(%arg0: i32, %arg1: i32) -> (i32, i32) {
    %c2_i32 = arith.constant 2 : i32
    %0 = arith.muli %arg0, %c2_i32 : i32
    %1 = arith.addi %0, %arg1 : i32
    %c0_i32 = arith.constant 0 : i32
    %c0_i32_0 = arith.constant 0 : i32
    return %1, %c0_i32 : i32, i32
  }
  func.func @transform_1(%arg0: i32, %arg1: i32) -> (i32, i32) {
    %c0_i32 = arith.constant 0 : i32
    %c0_i32_0 = arith.constant 0 : i32
    %c0_i32_1 = arith.constant 0 : i32
    return %c0_i32, %c0_i32_0 : i32, i32
  }
  func.func @transform_2(%arg0: i32, %arg1: i32) -> (i32, i32) {
    %c2_i32 = arith.constant 2 : i32
    %0 = arith.muli %arg0, %c2_i32 : i32
    %1 = arith.addi %0, %arg1 : i32
    %c0_i32 = arith.constant 0 : i32
    %c0_i32_0 = arith.constant 0 : i32
    return %1, %c0_i32 : i32, i32
  }
  func.func @transform_3(%arg0: i32, %arg1: i32) -> (i32, i32) {
    %c0_i32 = arith.constant 0 : i32
    %c0_i32_0 = arith.constant 0 : i32
    return %arg0, %c0_i32 : i32, i32
  }
}

module attributes {stable_mosaic.version = 11 : i64} {
  func.func @_bn_relu_kernel(%arg0: i32, %arg1: memref<256x128xbf16, #tpu.memory_space<vmem>>, %arg2: memref<1x128xf32, #tpu.memory_space<vmem>>, %arg3: memref<1x128xf32, #tpu.memory_space<vmem>>, %arg4: memref<256x128xf32, #tpu.memory_space<vmem>>) attributes {dimension_semantics = [#tpu.dimension_semantics<parallel>], iteration_bounds = array<i64: 4>, scalar_prefetch = 0 : i64, scratch_operands = 0 : i64, tpu.core_type = #tpu.core_type<tc>, window_params = [{transform_indices = @transform_0, window_bounds = array<i64: 256, 128>}, {pipeline_mode = #tpu.pipeline_mode<synchronous>, transform_indices = @transform_1, window_bounds = array<i64: 1, 128>}, {pipeline_mode = #tpu.pipeline_mode<synchronous>, transform_indices = @transform_2, window_bounds = array<i64: 1, 128>}, {transform_indices = @transform_3, window_bounds = array<i64: 256, 128>}]} {
    %c0 = arith.constant 0 : index
    %c0_0 = arith.constant 0 : index
    %0 = vector.load %arg1[%c0, %c0_0] : memref<256x128xbf16, #tpu.memory_space<vmem>>, vector<256x128xbf16>
    %1 = arith.extf %0 : vector<256x128xbf16> to vector<256x128xf32>
    %c0_1 = arith.constant 0 : index
    %c0_2 = arith.constant 0 : index
    %2 = vector.load %arg2[%c0_1, %c0_2] : memref<1x128xf32, #tpu.memory_space<vmem>>, vector<1x128xf32>
    %3 = vector.broadcast %2 : vector<1x128xf32> to vector<256x128xf32>
    %4 = arith.mulf %1, %3 : vector<256x128xf32>
    %c0_3 = arith.constant 0 : index
    %c0_4 = arith.constant 0 : index
    %5 = vector.load %arg3[%c0_3, %c0_4] : memref<1x128xf32, #tpu.memory_space<vmem>>, vector<1x128xf32>
    %6 = vector.broadcast %5 : vector<1x128xf32> to vector<256x128xf32>
    %7 = arith.addf %4, %6 : vector<256x128xf32>
    %cst = arith.constant 0.000000e+00 : f32
    %8 = vector.broadcast %cst : f32 to vector<256x128xf32>
    %9 = arith.maximumf %7, %8 : vector<256x128xf32>
    %c0_5 = arith.constant 0 : index
    %c0_6 = arith.constant 0 : index
    %10 = vector.load %arg4[%c0_5, %c0_6] : memref<256x128xf32, #tpu.memory_space<vmem>>, vector<256x128xf32>
    tpu.vector_store %arg4[%c0_5, %c0_6], %9 {strides = array<i32>} : memref<256x128xf32, #tpu.memory_space<vmem>>, vector<256x128xf32>,
    return
  }
  func.func @transform_0(%arg0: i32) -> (i32, i32) {
    %c0_i32 = arith.constant 0 : i32
    %c0_i32_0 = arith.constant 0 : i32
    return %arg0, %c0_i32 : i32, i32
  }
  func.func @transform_1(%arg0: i32) -> (i32, i32) {
    %c0_i32 = arith.constant 0 : i32
    %c0_i32_0 = arith.constant 0 : i32
    %c0_i32_1 = arith.constant 0 : i32
    return %c0_i32, %c0_i32_0 : i32, i32
  }
  func.func @transform_2(%arg0: i32) -> (i32, i32) {
    %c0_i32 = arith.constant 0 : i32
    %c0_i32_0 = arith.constant 0 : i32
    %c0_i32_1 = arith.constant 0 : i32
    return %c0_i32, %c0_i32_0 : i32, i32
  }
  func.func @transform_3(%arg0: i32) -> (i32, i32) {
    %c0_i32 = arith.constant 0 : i32
    %c0_i32_0 = arith.constant 0 : i32
    return %arg0, %c0_i32 : i32, i32
  }
}

</mosaic_0001>

<bundles_post_ra>
// kernel: affnet_stem.4
= control target key start
LH: loop header
LB: loop body
LE: loop exit
PB: predicated region body
PF: predicated region fallthrough
CT: control target
= control target key end

     0   :  { %s1110_s12 = smov 0   ;;  %s1112_s13 = smov 0   ;;  %s1341_s0 = inlined_call_operand.vmem [shape: bf16[1024,32], index: 0, kind: input, shape index: {}]   ;;  %s1342_s1 = inlined_call_operand.vmem [shape: bf16[32,128], index: 1, kind: input, shape index: {}]   ;;  %s1343_s2 = inlined_call_operand.vmem [shape: bf16[1024,128], index: 2, kind: output, shape index: {0}]   ;;  %s1344_s3 = inlined_call_operand.vmem [shape: f32[16,128], index: 3, kind: output, shape index: {1}]  }
   0x1   :  { %s1114_s14 = smov 0   ;;  %s1116_s15 = smov 0  }
   0x2   :  { %s1118_s16 = smov 0  }
   0x3 LB: > { %s23_s17 = sadd.s32 1, %s1079_s14  ;;  %s26_s18 = sadd.s32 1, %s1083_s15  ;;  %s1087_s16 = sphi %s1118_s16, %s14_s16   ;;  %s1083_s15 = sphi %s1116_s15, %s1348_s15   ;;  %s1079_s14 = sphi %s1114_s14, %s1347_s14   ;;  %s1075_s13 = sphi %s1112_s13, %s1346_s13   ;;  %s1071_s12 = sphi %s1110_s12, %s1345_s12  }
   0x4   : > { %p24_p0 = scmp.ge.s32.totalorder %s23_s17, 2  ;;  %p790_p1 = scmp.ge.s32.totalorder %s1087_s16, 1 }
   0x5   : > { %p165_p2 = scmp.lt.s32.totalorder %s1087_s16, 5 }
   0x6   : > { %s1350_s17 = smov (%p24_p0, %s23_s17), 0  ;;  %s1352_s18 = smov (!%p24_p0, %s26_s18), %s1083_s15 }
   0x7   : > { %p166_p3 = pnand %p790_p1, %p165_p2  ;;  %p28_p4 = scmp.ge.s32.totalorder %s1352_s18, 2 }
   0x8   : > { %s791_s19 = sshll.u32 (!%p166_p3), %s1075_s13, 1  ;;  %p217_p5 = scmp.lt.s32.totalorder (!%p166_p3), %s1075_s13, 1 }
   0x9   : > { %s1354_s18 = smov (%p28_p4, %s1352_s18), 0  ;;  %169 = sbr.rel (%p166_p3) target bundleno = 284 (0x11c), region = 28 }
   0xa   : > { %s198_s20 = sadd.s32 (!%p166_p3), %s1071_s12, %s791_s19  ;;  %p798_p7 = scmp.ne.s32.totalorder (!%p166_p3), %s1071_s12, 0 }
   0xb   : > { %s792_s21 = sshll.u32 (!%p166_p3), %s198_s20, 5 }
   0xc   : > { %p200_p6 = scmp.lt.s32.totalorder (!%p166_p3), %s792_s21, 127 }
   0xe   : > { %s1356_s13 = smov (!%p217_p5, %s1075_s13), 1  ;;  %s1358_s21 = smov (!%p200_p6, %s792_s21), 127 }
   0xf   : > { %s797_s22 = sshll.u32 %s1356_s13, 3  ;;  %s793_s23 = sshll.u32 %s1358_s21, 2 }
  0x10   : > { %s1143_s26 = scalar_lea.vmem %s1344_s3, %s797_s22  ;;  %s1148_s29 = scalar_lea.vmem %s1341_s0, %s793_s23 }
  0x11   : > { %s1153_s5 = scalar_lea.vmem %s1343_s2, %s793_s23  ;;  %225 = sbr.rel (%p798_p7) target bundleno = 24 (0x18), region = 32 }
  0x16   : > { %v1089_v0 = vmov 0.0  }
  0x17   : > { %226 = vst [vmem:[%s1143_s26] sm:$0xff] %v1089_v0 }
  0x18 PF: > { %v906_v1 = vld [vmem:[%s1342_s1 + $0x8] sm:$0xff]  ;;  %v905_v2 = vld [vmem:[%s1342_s1] sm:$0xff]  ;;  %vm355_vm0 = vcmask 261120   ;;  %v891_v11 = vld [vmem:[%s1148_s29 + $0x10] sm:$0xff] }
  0x19   : > { %410 = vmatpush.bf16.msra.mxu0 %v906_v1  ;;  %1002 = vmatpush.bf16.msra.mxu1 %v906_v1  ;;  %v889_v3 = vld [vmem:[%s1148_s29] sm:$0xff]  ;;  %v890_v7 = vld [vmem:[%s1148_s29 + $0x8] sm:$0xff]  ;;  %v895_v12 = vld [vmem:[%s1148_s29 + $0x30] sm:$0xff] }
  0x1a   : > { %1003 = vmatpush.bf16.msra.mxu2 %v906_v1  ;;  %1004 = vmatpush.bf16.msra.mxu3 %v906_v1  ;;  %v893_v4 = vld [vmem:[%s1148_s29 + $0x20] sm:$0xff]  ;;  %v894_v8 = vld [vmem:[%s1148_s29 + $0x28] sm:$0xff]  ;;  %v899_v13 = vld [vmem:[%s1148_s29 + $0x50] sm:$0xff] }
  0x1b   : > { %v897_v5 = vld [vmem:[%s1148_s29 + $0x40] sm:$0xff]  ;;  %v898_v9 = vld [vmem:[%s1148_s29 + $0x48] sm:$0xff]  ;;  %v903_v14 = vld [vmem:[%s1148_s29 + $0x70] sm:$0xff] }
  0x1c   : > { %v901_v6 = vld [vmem:[%s1148_s29 + $0x60] sm:$0xff]  ;;  %v902_v10 = vld [vmem:[%s1148_s29 + $0x68] sm:$0xff]  ;;  %v892_v15 = vld [vmem:[%s1148_s29 + $0x18] sm:$0xff] }
  0x1d   : > { %411 = vmatpush.bf16.msra.mxu0 %v905_v2  ;;  %1005 = vmatpush.bf16.msra.mxu1 %v905_v2  ;;  %v896_v16 = vld [vmem:[%s1148_s29 + $0x38] sm:$0xff] }
  0x1e   : > { %1006 = vmatpush.bf16.msra.mxu2 %v905_v2  ;;  %1007 = vmatpush.bf16.msra.mxu3 %v905_v2  ;;  %v900_v17 = vld [vmem:[%s1148_s29 + $0x58] sm:$0xff] }
  0x1f   : > { %v904_v18 = vld [vmem:[%s1148_s29 + $0x78] sm:$0xff] }
  0x20   : > { %871 = vmatmul.msk.bf16.vlgmr.msra.gmra.mxu0 %vm355_vm0, %v889_v3  ;;  %875 = vmatmul.msk.bf16.vlgmr.msra.gmra.mxu1 %vm355_vm0, %v893_v4 }
  0x21   : > { %879 = vmatmul.msk.bf16.vlgmr.msra.gmra.mxu2 %vm355_vm0, %v897_v5  ;;  %883 = vmatmul.msk.bf16.vlgmr.msra.gmra.mxu3 %vm355_vm0, %v901_v6 }
  0x30   : > { %872 = vmatmul.msk.bf16.gmra.mxu0 %vm355_vm0, %v890_v7  ;;  %876 = vmatmul.msk.bf16.gmra.mxu1 %vm355_vm0, %v894_v8 }
  0x31   : > { %880 = vmatmul.msk.bf16.gmra.mxu2 %vm355_vm0, %v898_v9  ;;  %884 = vmatmul.msk.bf16.gmra.mxu3 %vm355_vm0, %v902_v10 }
  0x40   : > { %873 = vmatmul.msk.bf16.gmra.mxu0 %vm355_vm0, %v891_v11  ;;  %877 = vmatmul.msk.bf16.gmra.mxu1 %vm355_vm0, %v895_v12 }
  0x41   : > { %881 = vmatmul.msk.bf16.gmra.mxu2 %vm355_vm0, %v899_v13  ;;  %885 = vmatmul.msk.bf16.gmra.mxu3 %vm355_vm0, %v903_v14 }
  0x50   : > { %874 = vmatmul.msk.bf16.gmra.mxu0 %vm355_vm0, %v892_v15  ;;  %878 = vmatmul.msk.bf16.gmra.mxu1 %vm355_vm0, %v896_v16 }
  0x51   : > { %882 = vmatmul.msk.bf16.gmra.mxu2 %vm355_vm0, %v900_v17  ;;  %886 = vmatmul.msk.bf16.gmra.mxu3 %vm355_vm0, %v904_v18 }
  0x9d   : > { %v413_v19 = vpop.f32.mrf.mxu0  ;;  %v1194_v20 = vpop.f32.mrf.mxu1 }
  0x9e   : > { %v594_v52 = vmul.f32 %v413_v19, %v413_v19 }
  0xa4   : > { %v1196_v21 = vpop.f32.mrf.mxu2  ;;  %v1202_v26 = vpop.f32.mrf.mxu3 }
  0xa5   : > { %v415_v22 = vpop.f32.mrf.mxu0  ;;  %v1198_v23 = vpop.f32.mrf.mxu1 }
  0xa6   : > { %v910_v24 = vpack.c.bf16 %v415_v22, %v413_v19  ;;  %v930_v25 = vpack.c.bf16 %v1198_v23, %v1194_v20  ;;  %v595_v51 = vmul.f32 %v415_v22, %v415_v22  ;;  %v557_v54 = vadd.f32 %v415_v22, %v413_v19 }
  0xa7   : > { %v602_v22 = vmul.f32 %v1194_v20, %v1194_v20 }
  0xa8   : > { %911 = vst [vmem:[%s1153_s5] sm:$0xff] %v910_v24   ;;  %v626_v55 = vadd.f32 %v595_v51, %v594_v52 }
  0xa9   : > { %990 = vst [vmem:[%s1153_s5 + $0x20] sm:$0xff] %v930_v25  }
  0xac   : > { %v1206_v27 = vpop.f32.mrf.mxu2  ;;  %v1212_v31 = vpop.f32.mrf.mxu3 }
  0xad   : > { %v418_v28 = vpop.f32.mrf.mxu0  ;;  %v1208_v29 = vpop.f32.mrf.mxu1  ;;  %v950_v30 = vpack.c.bf16 %v1206_v27, %v1196_v21  ;;  %v970_v32 = vpack.c.bf16 %v1212_v31, %v1202_v26 }
  0xae   : > { %v596_v53 = vmul.f32 %v418_v28, %v418_v28  ;;  %v558_v57 = vadd.f32 %v557_v54, %v418_v28 }
  0xaf   : > { %994 = vst [vmem:[%s1153_s5 + $0x40] sm:$0xff] %v950_v30  }
  0xb0   : > { %998 = vst [vmem:[%s1153_s5 + $0x60] sm:$0xff] %v970_v32   ;;  %v627_v59 = vadd.f32 %v626_v55, %v596_v53 }
  0xb4   : > { %v1218_v33 = vpop.f32.mrf.mxu2  ;;  %v1224_v38 = vpop.f32.mrf.mxu3 }
  0xb5   : > { %v420_v34 = vpop.f32.mrf.mxu0  ;;  %v1220_v35 = vpop.f32.mrf.mxu1 }
  0xb6   : > { %v915_v36 = vpack.c.bf16 %v420_v34, %v418_v28  ;;  %v935_v37 = vpack.c.bf16 %v1220_v35, %v1208_v29  ;;  %v597_v56 = vmul.f32 %v420_v34, %v420_v34  ;;  %v559_v0 = vadd.f32 %v558_v57, %v420_v34 }
  0xb7   : > { %v603_v28 = vmul.f32 %v1198_v23, %v1198_v23  ;;  %v604_v34 = vmul.f32 %v1208_v29, %v1208_v29 }
  0xb8   : > { %987 = vst [vmem:[%s1153_s5 + $0x8] sm:$0xff] %v915_v36   ;;  %v628_v2 = vadd.f32 %v627_v59, %v597_v56 }
  0xb9   : > { %991 = vst [vmem:[%s1153_s5 + $0x28] sm:$0xff] %v935_v37  }
  0xbc   : > { %v1228_v39 = vpop.f32.mrf.mxu2  ;;  %v1234_v43 = vpop.f32.mrf.mxu3 }
  0xbd   : > { %v423_v40 = vpop.f32.mrf.mxu0  ;;  %v1230_v41 = vpop.f32.mrf.mxu1  ;;  %v955_v42 = vpack.c.bf16 %v1228_v39, %v1218_v33  ;;  %v975_v44 = vpack.c.bf16 %v1234_v43, %v1224_v38 }
  0xbe   : > { %v598_v60 = vmul.f32 %v423_v40, %v423_v40  ;;  %v560_v5 = vadd.f32 %v559_v0, %v423_v40  ;;  %v611_v0 = vmul.f32 %v1206_v27, %v1206_v27 }
  0xbf   : > { %995 = vst [vmem:[%s1153_s5 + $0x48] sm:$0xff] %v955_v42  }
  0xc0   : > { %999 = vst [vmem:[%s1153_s5 + $0x68] sm:$0xff] %v975_v44   ;;  %v629_v6 = vadd.f32 %v628_v2, %v598_v60 }
  0xc4   : > { %v1240_v45 = vpop.f32.mrf.mxu2  ;;  %v1246_v50 = vpop.f32.mrf.mxu3 }
  0xc5   : > { %v425_v46 = vpop.f32.mrf.mxu0  ;;  %v1242_v47 = vpop.f32.mrf.mxu1 }
  0xc6   : > { %v920_v48 = vpack.c.bf16 %v425_v46, %v423_v40  ;;  %v940_v49 = vpack.c.bf16 %v1242_v47, %v1230_v41  ;;  %v599_v3 = vmul.f32 %v425_v46, %v425_v46  ;;  %v561_v8 = vadd.f32 %v560_v5, %v425_v46 }
  0xc7   : > { %v613_v5 = vmul.f32 %v1228_v39, %v1228_v39 }
  0xc8   : > { %988 = vst [vmem:[%s1153_s5 + $0x10] sm:$0xff] %v920_v48   ;;  %v630_v9 = vadd.f32 %v629_v6, %v599_v3 }
  0xc9   : > { %992 = vst [vmem:[%s1153_s5 + $0x30] sm:$0xff] %v940_v49   ;;  %v606_v49 = vmul.f32 %v1230_v41, %v1230_v41 }
  0xcc   : > { %v1250_v58 = vpop.f32.mrf.mxu2  ;;  %v1254_v1 = vpop.f32.mrf.mxu3 }
  0xcd   : > { %v428_v61 = vpop.f32.mrf.mxu0  ;;  %v448_v62 = vpop.f32.mrf.mxu1  ;;  %v960_v63 = vpack.c.bf16 %v1250_v58, %v1240_v45  ;;  %v980_v4 = vpack.c.bf16 %v1254_v1, %v1246_v50 }
  0xce   : > { %v600_v7 = vmul.f32 %v428_v61, %v428_v61  ;;  %v562_v10 = vadd.f32 %v561_v8, %v428_v61  ;;  %v608_v56 = vmul.f32 %v448_v62, %v448_v62 }
  0xcf   : > { %996 = vst [vmem:[%s1153_s5 + $0x50] sm:$0xff] %v960_v63  }
  0xd0   : > { %1000 = vst [vmem:[%s1153_s5 + $0x70] sm:$0xff] %v980_v4   ;;  %v631_v12 = vadd.f32 %v630_v9, %v600_v7 }
  0xd4   : > { %v468_v11 = vpop.f32.mrf.mxu2  ;;  %v1260_v19 = vpop.f32.mrf.mxu3 }
  0xd5   : > { %v430_v13 = vpop.f32.mrf.mxu0  ;;  %v450_v14 = vpop.f32.mrf.mxu1 }
  0xd6   : > { %v925_v15 = vpack.c.bf16 %v430_v13, %v428_v61  ;;  %v563_v16 = vadd.f32 %v562_v10, %v430_v13  ;;  %v601_v17 = vmul.f32 %v430_v13, %v430_v13  ;;  %v945_v18 = vpack.c.bf16 %v450_v14, %v448_v62 }
  0xd7   : > { %v609_v60 = vmul.f32 %v450_v14, %v450_v14  ;;  %v610_v61 = vmul.f32 %v1196_v21, %v1196_v21  ;;  %v615_v10 = vmul.f32 %v1250_v58, %v1250_v58 }
  0xd8   : > { %989 = vst [vmem:[%s1153_s5 + $0x18] sm:$0xff] %v925_v15   ;;  %v564_v24 = vadd.f32 %v563_v16, %v1194_v20  ;;  %v632_v25 = vadd.f32 %v631_v12, %v601_v17  ;;  %v605_v20 = vmul.f32 %v1220_v35, %v1220_v35 }
  0xd9   : > { %993 = vst [vmem:[%s1153_s5 + $0x38] sm:$0xff] %v945_v18  }
  0xda   : > { %v565_v30 = vadd.f32 %v564_v24, %v1198_v23  ;;  %v633_v32 = vadd.f32 %v632_v25, %v602_v22 }
  0xdc   : > { %v566_v36 = vadd.f32 %v565_v30, %v1208_v29  ;;  %v634_v37 = vadd.f32 %v633_v32, %v603_v28  ;;  %v470_v40 = vpop.f32.mrf.mxu2  ;;  %v490_v48 = vpop.f32.mrf.mxu3  ;;  %v607_v29 = vmul.f32 %v1242_v47, %v1242_v47  ;;  %v621_v30 = vmul.f32 %v1234_v43, %v1234_v43 }
  0xdd   : > { %v965_v42 = vpack.c.bf16 %v470_v40, %v468_v11  ;;  %v985_v23 = vpack.c.bf16 %v490_v48, %v1260_v19  ;;  %v617_v17 = vmul.f32 %v470_v40, %v470_v40 }
  0xde   : > { %v635_v44 = vadd.f32 %v634_v37, %v604_v34  ;;  %v567_v46 = vadd.f32 %v566_v36, %v1220_v35 }
  0xdf   : > { %997 = vst [vmem:[%s1153_s5 + $0x58] sm:$0xff] %v965_v42  }
  0xe0   : > { %v568_v51 = vadd.f32 %v567_v46, %v1230_v41  ;;  %v636_v52 = vadd.f32 %v635_v44, %v605_v20  ;;  %1001 = vst [vmem:[%s1153_s5 + $0x78] sm:$0xff] %v985_v23   ;;  %v624_v44 = vmul.f32 %v1260_v19, %v1260_v19  ;;  %v625_v23 = vmul.f32 %v490_v48, %v490_v48 }
  0xe2   : > { %v569_v53 = vadd.f32 %v568_v51, %v1242_v47  ;;  %v637_v54 = vadd.f32 %v636_v52, %v606_v49  ;;  %v612_v47 = vmul.f32 %v1218_v33, %v1218_v33 }
  0xe4   : > { %v570_v55 = vadd.f32 %v569_v53, %v448_v62  ;;  %v638_v35 = vadd.f32 %v637_v54, %v607_v29  ;;  %v663_v29 = vlaneseq }
  0xe6   : > { %v639_v57 = vadd.f32 %v638_v35, %v608_v56  ;;  %v571_v59 = vadd.f32 %v570_v55, %v450_v14  ;;  %v616_v14 = vmul.f32 %v468_v11, %v468_v11  ;;  %v664_v56 = vshrl.u32 %v663_v29, 7 }
  0xe8   : > { %v572_v63 = vadd.f32 %v571_v59, %v1196_v21  ;;  %v640_v41 = vadd.f32 %v639_v57, %v609_v60  ;;  %v614_v21 = vmul.f32 %v1240_v45, %v1240_v45  ;;  %vm665_vm1 = vcmp.eq.s32.totalorder %v664_v56, 0 }
  0xe9   : > { %vm669_vm2 = vcmp.eq.s32.totalorder %v664_v56, 1 }
  0xea   : > { %v573_v2 = vadd.f32 %v572_v63, %v1206_v27  ;;  %v641_v3 = vadd.f32 %v640_v41, %v610_v61  ;;  %v674_v63 = vld [vmem:[%s1143_s26] sm:$0xff] }
  0xec   : > { %v574_v62 = vadd.f32 %v573_v2, %v1218_v33  ;;  %v642_v4 = vadd.f32 %v641_v3, %v611_v0 }
  0xee   : > { %v643_v6 = vadd.f32 %v642_v4, %v612_v47  ;;  %v575_v7 = vadd.f32 %v574_v62, %v1228_v39  ;;  %v618_v39 = vmul.f32 %v1202_v26, %v1202_v26 }
  0xf0   : > { %v576_v8 = vadd.f32 %v575_v7, %v1240_v45  ;;  %v644_v9 = vadd.f32 %v643_v6, %v613_v5  ;;  %v619_v45 = vmul.f32 %v1212_v31, %v1212_v31 }
  0xf2   : > { %v577_v27 = vadd.f32 %v576_v8, %v1250_v58  ;;  %v645_v12 = vadd.f32 %v644_v9, %v614_v21  ;;  %v620_v58 = vmul.f32 %v1224_v38, %v1224_v38 }
  0xf4   : > { %v646_v33 = vadd.f32 %v645_v12, %v615_v10  ;;  %v578_v13 = vadd.f32 %v577_v27, %v468_v11 }
  0xf6   : > { %v647_v15 = vadd.f32 %v646_v33, %v616_v14  ;;  %v579_v16 = vadd.f32 %v578_v13, %v470_v40  ;;  %v623_v40 = vmul.f32 %v1254_v1, %v1254_v1 }
  0xf8   : > { %v580_v18 = vadd.f32 %v579_v16, %v1202_v26  ;;  %v648_v22 = vadd.f32 %v647_v15, %v617_v17  ;;  %v622_v26 = vmul.f32 %v1246_v50, %v1246_v50 }
  0xfa   : > { %v581_v24 = vadd.f32 %v580_v18, %v1212_v31  ;;  %v649_v25 = vadd.f32 %v648_v22, %v618_v39 }
  0xfc   : > { %v582_v11 = vadd.f32 %v581_v24, %v1224_v38  ;;  %v650_v28 = vadd.f32 %v649_v25, %v619_v45 }
  0xfe   : > { %v651_v32 = vadd.f32 %v650_v28, %v620_v58  ;;  %v583_v34 = vadd.f32 %v582_v11, %v1234_v43 }
 0x100   : > { %v584_v36 = vadd.f32 %v583_v34, %v1246_v50  ;;  %v652_v37 = vadd.f32 %v651_v32, %v621_v30 }
 0x102   : > { %v585_v31 = vadd.f32 %v584_v36, %v1254_v1  ;;  %v653_v42 = vadd.f32 %v652_v37, %v622_v26 }
 0x104   : > { %v654_v38 = vadd.f32 %v653_v42, %v623_v40  ;;  %v586_v20 = vadd.f32 %v585_v31, %v1260_v19 }
 0x106   : > { %v655_v46 = vadd.f32 %v654_v38, %v624_v44  ;;  %v587_v43 = vadd.f32 %v586_v20, %v490_v48 }
 0x108   : > { %v588_v49 = vrot.slane %v587_v43, 4  ;;  %v656_v51 = vadd.f32 %v655_v46, %v625_v23 }
 0x10a   : > { %v589_v52 = vadd.f32 %v588_v49, %v587_v43  ;;  %v657_v50 = vrot.slane %v656_v51, 4 }
 0x10c   : > { %v590_v53 = vrot.slane %v589_v52, 2  ;;  %v658_v54 = vadd.f32 %v657_v50, %v656_v51 }
 0x10e   : > { %v591_v1 = vadd.f32 %v590_v53, %v589_v52  ;;  %v659_v55 = vrot.slane %v658_v54, 2 }
 0x110   : > { %v592_v35 = vrot.slane %v591_v1, 1  ;;  %v660_v57 = vadd.f32 %v659_v55, %v658_v54 }
 0x112   : > { %v593_v59 = vadd.f32 %v592_v35, %v591_v1  ;;  %v661_v60 = vrot.slane %v660_v57, 1 }
 0x114   : > { %v662_v19 = vadd.f32 %v661_v60, %v660_v57  ;;  %v668_v48 = vsel %vm665_vm1, %v593_v59, 0.0 }
 0x116   : > { %v672_v61 = vsel %vm669_vm2, %v662_v19, 0.0 }
 0x117   : > { %v673_v41 = vadd.f32 %v672_v61, %v668_v48 }
 0x119   : > { %v675_v0 = vadd.f32 %v674_v63, %v673_v41 }
 0x11b   : > { %676 = vst [vmem:[%s1143_s26] sm:$0xff] %v675_v0 }
 0x11c PF: > { %s14_s16 = sadd.s32 1, %s1087_s16   ;;  %s1345_s12 = smov %s1079_s14 }
 0x11d   : > { %p11_p8 = scmp.ge.s32.totalorder %s14_s16, 6   ;;  %s1346_s13 = smov %s1083_s15 }
 0x11e   : > { %s1347_s14 = smov %s1350_s17  ;;  %s1348_s15 = smov %s1354_s18 }
 0x11f   :  { %13 = sbr.rel (!%p11_p8) target bundleno = 3 (0x3), region = 74 }

// kernel: affnet_stem.5
= control target key start
LH: loop header
LB: loop body
LE: loop exit
PB: predicated region body
PF: predicated region fallthrough
CT: control target
= control target key end

     0   :  { %s685_s12 = smov 0   ;;  %s819_s0 = inlined_call_operand.vmem [shape: bf16[1024,128], index: 0, kind: input, shape index: {}]   ;;  %s820_s1 = inlined_call_operand.vmem [shape: f32[1,128], index: 1, kind: input, shape index: {}]   ;;  %s821_s2 = inlined_call_operand.vmem [shape: f32[1,128], index: 2, kind: input, shape index: {}]   ;;  %s822_s3 = inlined_call_operand.vmem [shape: bf16[1024,128], index: 3, kind: output, shape index: {}]  }
   0x1 LB: > { %s462_s13 = sadd.s32 4294967295, %s663_s12   ;;  %p466_p0 = scmp.ge.s32.totalorder %s663_s12, 1  ;;  %s663_s12 = sphi %s685_s12, %s13_s12  }
   0x2   : > { %p138_p1 = scmp.lt.s32.totalorder %s663_s12, 5 }
   0x4   : > { %p139_p2 = pnand %p466_p0, %p138_p1 }
   0x5   : > { %s467_s14 = sshll.u32 (!%p139_p2), %s462_s13, 5 }
   0x6   : > { %142 = sbr.rel (%p139_p2) target bundleno = 57 (0x39), region = 32  ;;  %p163_p3 = scmp.lt.s32.totalorder (!%p139_p2), %s467_s14, 127 }
   0xb   : > { %s824_s14 = smov (!%p163_p3, %s467_s14), 127  ;;  %v706_v0 = vld [vmem:[%s820_s1] ss:$0 sm:$0xff] }
   0xc   : > { %s468_s15 = sshll.u32 %s824_s14, 2  ;;  %v714_v6 = vld [vmem:[%s821_s2] ss:$0 sm:$0xff] }
   0xd   : > { %s701_s18 = scalar_lea.vmem %s819_s0, %s468_s15  ;;  %s740_s25 = scalar_lea.vmem %s822_s3, %s468_s15 }
   0xe   : > { %v474_v1 = vld [vmem:[%s701_s18] sm:$0xff]   ;;  %v617_v2 = vld [vmem:[%s701_s18 + $0x8] sm:$0xff]   ;;  %v618_v3 = vld [vmem:[%s701_s18 + $0x10] sm:$0xff]  }
   0xf   : > { %v475_v4 = vunpack.c.l.bf16 %v474_v1  ;;  %v476_v5 = vunpack.c.h.bf16 %v474_v1  ;;  %v479_v7 = vunpack.c.l.bf16 %v617_v2  ;;  %v480_v8 = vunpack.c.h.bf16 %v617_v2  ;;  %v619_v9 = vld [vmem:[%s701_s18 + $0x18] sm:$0xff]   ;;  %v620_v30 = vld [vmem:[%s701_s18 + $0x20] sm:$0xff]   ;;  %v621_v35 = vld [vmem:[%s701_s18 + $0x28] sm:$0xff]  }
  0x10   : > { %v483_v10 = vunpack.c.l.bf16 %v618_v3  ;;  %v484_v11 = vunpack.c.h.bf16 %v618_v3  ;;  %v487_v12 = vunpack.c.l.bf16 %v619_v9  ;;  %v488_v13 = vunpack.c.h.bf16 %v619_v9  ;;  %v622_v40 = vld [vmem:[%s701_s18 + $0x30] sm:$0xff]   ;;  %v623_v45 = vld [vmem:[%s701_s18 + $0x38] sm:$0xff]   ;;  %v624_v3 = vld [vmem:[%s701_s18 + $0x40] sm:$0xff]  }
  0x11   : > { %v242_v14 = vmul.f32 %v706_v0, %v475_v4  ;;  %v243_v15 = vmul.f32 %v706_v0, %v476_v5  ;;  %v244_v16 = vmul.f32 %v706_v0, %v479_v7  ;;  %v245_v17 = vmul.f32 %v706_v0, %v480_v8 }
  0x12   : > { %v246_v18 = vmul.f32 %v706_v0, %v483_v10  ;;  %v247_v19 = vmul.f32 %v706_v0, %v484_v11  ;;  %v248_v20 = vmul.f32 %v706_v0, %v487_v12  ;;  %v249_v21 = vmul.f32 %v706_v0, %v488_v13  ;;  %v625_v13 = vld [vmem:[%s701_s18 + $0x48] sm:$0xff]  }
  0x13   : > { %v278_v22 = vadd.f32 %v714_v6, %v242_v14  ;;  %v279_v23 = vadd.f32 %v714_v6, %v243_v15  ;;  %v280_v24 = vadd.f32 %v714_v6, %v244_v16  ;;  %v281_v25 = vadd.f32 %v714_v6, %v245_v17 }
  0x14   : > { %v282_v26 = vadd.f32 %v714_v6, %v246_v18  ;;  %v283_v27 = vadd.f32 %v714_v6, %v247_v19  ;;  %v284_v28 = vadd.f32 %v714_v6, %v248_v20  ;;  %v285_v29 = vadd.f32 %v714_v6, %v249_v21  ;;  %v626_v18 = vld [vmem:[%s701_s18 + $0x50] sm:$0xff]  }
  0x15   : > { %v310_v31 = vmax.f32 %v278_v22, 0.0  ;;  %v311_v32 = vmax.f32 %v279_v23, 0.0  ;;  %v312_v33 = vmax.f32 %v280_v24, 0.0  ;;  %v313_v34 = vmax.f32 %v281_v25, 0.0  ;;  %v627_v23 = vld [vmem:[%s701_s18 + $0x58] sm:$0xff]  }
  0x16   : > { %v314_v36 = vmax.f32 %v282_v26, 0.0  ;;  %v315_v37 = vmax.f32 %v283_v27, 0.0  ;;  %v316_v38 = vmax.f32 %v284_v28, 0.0  ;;  %v317_v39 = vmax.f32 %v285_v29, 0.0 }
  0x17   : > { %v540_v41 = vpack.c.bf16 %v311_v32, %v310_v31  ;;  %v545_v42 = vpack.c.bf16 %v313_v34, %v312_v33  ;;  %v491_v43 = vunpack.c.l.bf16 %v620_v30  ;;  %v492_v44 = vunpack.c.h.bf16 %v620_v30 }
  0x18   : > { %v550_v46 = vpack.c.bf16 %v315_v37, %v314_v36  ;;  %v555_v47 = vpack.c.bf16 %v317_v39, %v316_v38  ;;  %v495_v48 = vunpack.c.l.bf16 %v621_v35  ;;  %v496_v49 = vunpack.c.h.bf16 %v621_v35 }
  0x19   : > { %541 = vst [vmem:[%s740_s25] sm:$0xff] %v540_v41   ;;  %v250_v50 = vmul.f32 %v706_v0, %v491_v43  ;;  %v251_v51 = vmul.f32 %v706_v0, %v492_v44  ;;  %v499_v52 = vunpack.c.l.bf16 %v622_v40  ;;  %v500_v53 = vunpack.c.h.bf16 %v622_v40  ;;  %v628_v40 = vld [vmem:[%s701_s18 + $0x60] sm:$0xff]  }
  0x1a   : > { %632 = vst [vmem:[%s740_s25 + $0x8] sm:$0xff] %v545_v42   ;;  %v252_v54 = vmul.f32 %v706_v0, %v495_v48  ;;  %v253_v55 = vmul.f32 %v706_v0, %v496_v49  ;;  %v503_v56 = vunpack.c.l.bf16 %v623_v45  ;;  %v504_v57 = vunpack.c.h.bf16 %v623_v45 }
  0x1b   : > { %633 = vst [vmem:[%s740_s25 + $0x10] sm:$0xff] %v550_v46   ;;  %v286_v58 = vadd.f32 %v714_v6, %v250_v50  ;;  %v287_v59 = vadd.f32 %v714_v6, %v251_v51  ;;  %v254_v60 = vmul.f32 %v706_v0, %v499_v52  ;;  %v255_v61 = vmul.f32 %v706_v0, %v500_v53  ;;  %v629_v53 = vld [vmem:[%s701_s18 + $0x68] sm:$0xff]  }
  0x1c   : > { %634 = vst [vmem:[%s740_s25 + $0x18] sm:$0xff] %v555_v47   ;;  %v288_v62 = vadd.f32 %v714_v6, %v252_v54  ;;  %v289_v63 = vadd.f32 %v714_v6, %v253_v55  ;;  %v256_v1 = vmul.f32 %v706_v0, %v503_v56  ;;  %v257_v2 = vmul.f32 %v706_v0, %v504_v57 }
  0x1d   : > { %v318_v4 = vmax.f32 %v286_v58, 0.0  ;;  %v319_v5 = vmax.f32 %v287_v59, 0.0  ;;  %v290_v7 = vadd.f32 %v714_v6, %v254_v60  ;;  %v291_v8 = vadd.f32 %v714_v6, %v255_v61  ;;  %v630_v58 = vld [vmem:[%s701_s18 + $0x70] sm:$0xff]  }
  0x1e   : > { %v320_v9 = vmax.f32 %v288_v62, 0.0  ;;  %v321_v10 = vmax.f32 %v289_v63, 0.0  ;;  %v292_v11 = vadd.f32 %v714_v6, %v256_v1  ;;  %v293_v12 = vadd.f32 %v714_v6, %v257_v2  ;;  %v631_v63 = vld [vmem:[%s701_s18 + $0x78] sm:$0xff]  }
  0x1f   : > { %v560_v14 = vpack.c.bf16 %v319_v5, %v318_v4  ;;  %v322_v15 = vmax.f32 %v290_v7, 0.0  ;;  %v323_v16 = vmax.f32 %v291_v8, 0.0  ;;  %v507_v17 = vunpack.c.l.bf16 %v624_v3 }
  0x20   : > { %v565_v19 = vpack.c.bf16 %v321_v10, %v320_v9  ;;  %v324_v20 = vmax.f32 %v292_v11, 0.0  ;;  %v325_v21 = vmax.f32 %v293_v12, 0.0  ;;  %v508_v22 = vunpack.c.h.bf16 %v624_v3 }
  0x21   : > { %635 = vst [vmem:[%s740_s25 + $0x20] sm:$0xff] %v560_v14   ;;  %v570_v24 = vpack.c.bf16 %v323_v16, %v322_v15  ;;  %v258_v25 = vmul.f32 %v706_v0, %v507_v17  ;;  %v511_v26 = vunpack.c.l.bf16 %v625_v13  ;;  %v512_v27 = vunpack.c.h.bf16 %v625_v13 }
  0x22   : > { %636 = vst [vmem:[%s740_s25 + $0x28] sm:$0xff] %v565_v19   ;;  %v575_v28 = vpack.c.bf16 %v325_v21, %v324_v20  ;;  %v259_v29 = vmul.f32 %v706_v0, %v508_v22  ;;  %v515_v30 = vunpack.c.l.bf16 %v626_v18  ;;  %v516_v31 = vunpack.c.h.bf16 %v626_v18 }
  0x23   : > { %637 = vst [vmem:[%s740_s25 + $0x30] sm:$0xff] %v570_v24   ;;  %v294_v32 = vadd.f32 %v714_v6, %v258_v25  ;;  %v260_v33 = vmul.f32 %v706_v0, %v511_v26  ;;  %v261_v34 = vmul.f32 %v706_v0, %v512_v27  ;;  %v519_v35 = vunpack.c.l.bf16 %v627_v23 }
  0x24   : > { %638 = vst [vmem:[%s740_s25 + $0x38] sm:$0xff] %v575_v28   ;;  %v295_v36 = vadd.f32 %v714_v6, %v259_v29  ;;  %v262_v37 = vmul.f32 %v706_v0, %v515_v30  ;;  %v263_v38 = vmul.f32 %v706_v0, %v516_v31  ;;  %v520_v39 = vunpack.c.h.bf16 %v627_v23 }
  0x25   : > { %v326_v41 = vmax.f32 %v294_v32, 0.0  ;;  %v296_v42 = vadd.f32 %v714_v6, %v260_v33  ;;  %v297_v43 = vadd.f32 %v714_v6, %v261_v34  ;;  %v264_v44 = vmul.f32 %v706_v0, %v519_v35 }
  0x26   : > { %v327_v45 = vmax.f32 %v295_v36, 0.0  ;;  %v298_v46 = vadd.f32 %v714_v6, %v262_v37  ;;  %v299_v47 = vadd.f32 %v714_v6, %v263_v38  ;;  %v265_v48 = vmul.f32 %v706_v0, %v520_v39 }
  0x27   : > { %v328_v49 = vmax.f32 %v296_v42, 0.0  ;;  %v329_v50 = vmax.f32 %v297_v43, 0.0  ;;  %v300_v51 = vadd.f32 %v714_v6, %v264_v44  ;;  %v523_v52 = vunpack.c.l.bf16 %v628_v40 }
  0x28   : > { %v580_v54 = vpack.c.bf16 %v327_v45, %v326_v41  ;;  %v330_v55 = vmax.f32 %v298_v46, 0.0  ;;  %v331_v56 = vmax.f32 %v299_v47, 0.0  ;;  %v301_v57 = vadd.f32 %v714_v6, %v265_v48 }
  0x29   : > { %v585_v59 = vpack.c.bf16 %v329_v50, %v328_v49  ;;  %v332_v60 = vmax.f32 %v300_v51, 0.0  ;;  %v524_v61 = vunpack.c.h.bf16 %v628_v40  ;;  %v266_v62 = vmul.f32 %v706_v0, %v523_v52 }
  0x2a   : > { %639 = vst [vmem:[%s740_s25 + $0x40] sm:$0xff] %v580_v54   ;;  %v590_v1 = vpack.c.bf16 %v331_v56, %v330_v55  ;;  %v333_v2 = vmax.f32 %v301_v57, 0.0  ;;  %v527_v3 = vunpack.c.l.bf16 %v629_v53  ;;  %v528_v4 = vunpack.c.h.bf16 %v629_v53 }
  0x2b   : > { %640 = vst [vmem:[%s740_s25 + $0x48] sm:$0xff] %v585_v59   ;;  %v267_v5 = vmul.f32 %v706_v0, %v524_v61  ;;  %v302_v7 = vadd.f32 %v714_v6, %v266_v62  ;;  %v531_v8 = vunpack.c.l.bf16 %v630_v58  ;;  %v532_v9 = vunpack.c.h.bf16 %v630_v58 }
  0x2c   : > { %641 = vst [vmem:[%s740_s25 + $0x50] sm:$0xff] %v590_v1   ;;  %v595_v10 = vpack.c.bf16 %v333_v2, %v332_v60  ;;  %v268_v11 = vmul.f32 %v706_v0, %v527_v3  ;;  %v269_v12 = vmul.f32 %v706_v0, %v528_v4  ;;  %v535_v13 = vunpack.c.l.bf16 %v631_v63 }
  0x2d   : > { %v303_v14 = vadd.f32 %v714_v6, %v267_v5  ;;  %v334_v15 = vmax.f32 %v302_v7, 0.0  ;;  %v270_v16 = vmul.f32 %v706_v0, %v531_v8  ;;  %v271_v17 = vmul.f32 %v706_v0, %v532_v9 }
  0x2e   : > { %642 = vst [vmem:[%s740_s25 + $0x58] sm:$0xff] %v595_v10   ;;  %v304_v18 = vadd.f32 %v714_v6, %v268_v11  ;;  %v305_v19 = vadd.f32 %v714_v6, %v269_v12  ;;  %v536_v20 = vunpack.c.h.bf16 %v631_v63  ;;  %v272_v21 = vmul.f32 %v706_v0, %v535_v13 }
  0x2f   : > { %v335_v22 = vmax.f32 %v303_v14, 0.0  ;;  %v306_v23 = vadd.f32 %v714_v6, %v270_v16  ;;  %v307_v24 = vadd.f32 %v714_v6, %v271_v17 }
  0x30   : > { %v336_v25 = vmax.f32 %v304_v18, 0.0  ;;  %v337_v26 = vmax.f32 %v305_v19, 0.0  ;;  %v273_v27 = vmul.f32 %v706_v0, %v536_v20  ;;  %v308_v28 = vadd.f32 %v714_v6, %v272_v21 }
  0x31   : > { %v600_v29 = vpack.c.bf16 %v335_v22, %v334_v15  ;;  %v338_v30 = vmax.f32 %v306_v23, 0.0  ;;  %v339_v31 = vmax.f32 %v307_v24, 0.0 }
  0x32   : > { %v605_v32 = vpack.c.bf16 %v337_v26, %v336_v25  ;;  %v309_v33 = vadd.f32 %v714_v6, %v273_v27  ;;  %v340_v34 = vmax.f32 %v308_v28, 0.0 }
  0x33   : > { %643 = vst [vmem:[%s740_s25 + $0x60] sm:$0xff] %v600_v29   ;;  %v610_v35 = vpack.c.bf16 %v339_v31, %v338_v30 }
  0x34   : > { %644 = vst [vmem:[%s740_s25 + $0x68] sm:$0xff] %v605_v32   ;;  %v341_v36 = vmax.f32 %v309_v33, 0.0 }
  0x35   : > { %645 = vst [vmem:[%s740_s25 + $0x70] sm:$0xff] %v610_v35  }
  0x36   : > { %v615_v37 = vpack.c.bf16 %v341_v36, %v340_v34 }
  0x38   : > { %646 = vst [vmem:[%s740_s25 + $0x78] sm:$0xff] %v615_v37  }
  0x39 PF: > { %s13_s12 = sadd.s32 1, %s663_s12  }
  0x3a   : > { %p10_p4 = scmp.ge.s32.totalorder %s13_s12, 6  }
  0x3c   :  { %12 = sbr.rel (!%p10_p4) target bundleno = 1 (0x1), region = 62 }

// kernel: affnet_stem.7
= control target key start
LH: loop header
LB: loop body
LE: loop exit
PB: predicated region body
PF: predicated region fallthrough
CT: control target
= control target key end

     0   :  { %8 = vsyncpa [#allocation3], 0  ;;  %s886_s0 = inlined_call_operand.vmem [shape: bf16[1024,128], index: 0, kind: input, shape index: {}]   ;;  %s887_s1 = inlined_call_operand.vmem [shape: f32[1,128], index: 1, kind: input, shape index: {}]   ;;  %s888_s2 = inlined_call_operand.vmem [shape: f32[1,128], index: 2, kind: input, shape index: {}]   ;;  %s889_s3 = inlined_call_operand.hbm [shape: f32[1024,128], index: 3, kind: output, shape index: {}]  }
   0x1   :  { %10 = vsyncpa [#allocation3 + $0x1], 0  ;;  %s671_s12 = smov 0   ;;  %s673_s13 = smov 0  }
   0x2   :  { %s675_s14 = smov 0   ;;  %s677_s15 = smov 0  }
   0x3 LB: > { %s692_s16 = sadd.s32 4294967295, %s647_s15   ;;  %s450_s17 = sadd.s32 4294967294, %s647_s15   ;;  %s647_s15 = sphi %s677_s15, %s895_s15   ;;  %s643_s14 = sphi %s675_s14, %s894_s14   ;;  %s639_s13 = sphi %s673_s13, %s893_s13   ;;  %s635_s12 = sphi %s671_s12, %s892_s12  }
   0x4   : > { %s696_s18 = sadd.s32 1, %s647_s15   ;;  %s91_s19 = sadd.s32 1, %s643_s14 }
   0x5   : > { %s88_s20 = ssub.s32 %s647_s15, %s696_s18  ;;  %p101_p0 = scmp.ne.s32.totalorder %s643_s14, %s639_s13 }
   0x6   : > { %p89_p1 = scmp.eq.s32.totalorder %s88_s20, 0  ;;  %p102_p2 = scmp.eq.s32.totalorder %s692_s16, 3 }
   0x7   : > { %p107_p3 = scmp.ne.s32.totalorder %s639_s13, %s635_s12  ;;  %p108_p4 = scmp.eq.s32.totalorder %s450_s17, 3 }
   0x8   : > { %s707_s21 = scalar_select %p89_p1, %s643_s14, %s91_s19  }
   0x9   : > { %p709_p5 = por %p102_p2, %p101_p0  ;;  %p713_p6 = por %p108_p4, %p107_p3 }
   0xa   : > { %p453_p7 = scmp.ge.s32.totalorder %s647_s15, 1  ;;  %p141_p8 = scmp.lt.s32.totalorder %s647_s15, 5 }
   0xc   : > { %p142_p9 = pnand %p453_p7, %p141_p8 }
   0xd   : > { %s455_s24 = sshll.u32 (!%p142_p9), %s692_s16, 5  ;;  %s162_s4 = sand.u32 (!%p142_p9), 1, %s639_s13  }
   0xe   : > { %145 = sbr.rel (%p142_p9) target bundleno = 66 (0x42), region = 32  ;;  %p166_p10 = scmp.lt.s32.totalorder (!%p142_p9), %s455_s24, 127 }
   0xf   : > { %s454_s7 = sshll.u32 (!%p142_p9), %s162_s4, 8  ;;  %s462_s9 = sshll.u32 (!%p142_p9), %s692_s16, 8 }
  0x10   : > { %s762_s8 = scalar_lea.vmem (!%p142_p9), [#allocation2], %s454_s7  ;;  %s384_s16 = scalar_lea.hbm (!%p142_p9), %s889_s3, %s462_s9 }
  0x11   : > { %s385_s17 = sshll.u32 (!%p142_p9), %s762_s8, 4  ;;  %s387_s19 = sshll.u32 (!%p142_p9), %s384_s16, 4  ;;  %s386_s17 = int_to_ptr.vmem [resolvable:$true] %s385_s17  ;;  %s388_s19 = int_to_ptr.hbm [resolvable:$true] %s387_s19 }
  0x12   : > { %s373_s20 = scalar_lea.sflag (!%p142_p9), [#allocation3], %s162_s4 }
  0x13   : > { %s897_s24 = smov (!%p166_p10, %s455_s24), 127  ;;  %v728_v0 = vld [vmem:[%s887_s1] ss:$0 sm:$0xff] }
  0x14   : > { %s456_s25 = sshll.u32 %s897_s24, 2  ;;  %v737_v5 = vld [vmem:[%s888_s2] ss:$0 sm:$0xff]  ;;  %s599_s24 = sshra.s32 %s388_s19, 4  ;;  %s600_s24 = int_to_ptr.hbm [resolvable:$true] %s599_s24 }
  0x15   : > { %s723_s28 = scalar_lea.vmem %s886_s0, %s456_s25  ;;  %s601_s25 = scalar_lea.hbm %s600_s24, 256 }
  0x16   : > { %v464_v1 = vld [vmem:[%s723_s28] sm:$0xff]   ;;  %v527_v2 = vld [vmem:[%s723_s28 + $0x8] sm:$0xff]   ;;  %v528_v3 = vld [vmem:[%s723_s28 + $0x10] sm:$0xff]   ;;  %p602_p11 = scmp.ne.s32.totalorder %s600_s24, %s601_s25  ;;  %p606_p0 = scmp.lt.s32.totalorder %s600_s24, %s889_s3 }
  0x17   : > { %v465_v4 = vunpack.c.l.bf16 %v464_v1  ;;  %v466_v6 = vunpack.c.h.bf16 %v464_v1  ;;  %v469_v7 = vunpack.c.l.bf16 %v527_v2  ;;  %v470_v8 = vunpack.c.h.bf16 %v527_v2  ;;  %v529_v9 = vld [vmem:[%s723_s28 + $0x18] sm:$0xff]   ;;  %v530_v30 = vld [vmem:[%s723_s28 + $0x20] sm:$0xff]   ;;  %v531_v31 = vld [vmem:[%s723_s28 + $0x28] sm:$0xff]  }
  0x18   : > { %v473_v10 = vunpack.c.l.bf16 %v528_v3  ;;  %v474_v11 = vunpack.c.h.bf16 %v528_v3  ;;  %v477_v12 = vunpack.c.l.bf16 %v529_v9  ;;  %v478_v13 = vunpack.c.h.bf16 %v529_v9  ;;  %v532_v36 = vld [vmem:[%s723_s28 + $0x30] sm:$0xff]   ;;  %v533_v37 = vld [vmem:[%s723_s28 + $0x38] sm:$0xff]   ;;  %v534_v3 = vld [vmem:[%s723_s28 + $0x40] sm:$0xff]   ;;  %p603_p12 = pnand %p602_p11, %p709_p5 }
  0x19   : > { %v240_v14 = vmul.f32 %v728_v0, %v465_v4  ;;  %v241_v15 = vmul.f32 %v728_v0, %v466_v6  ;;  %v242_v16 = vmul.f32 %v728_v0, %v469_v7  ;;  %v243_v17 = vmul.f32 %v728_v0, %v470_v8  ;;  %v535_v4 = vld [vmem:[%s723_s28 + $0x48] sm:$0xff]   ;;  %v536_v6 = vld [vmem:[%s723_s28 + $0x50] sm:$0xff]  }
  0x1a   : > { %v244_v18 = vmul.f32 %v728_v0, %v473_v10  ;;  %v245_v19 = vmul.f32 %v728_v0, %v474_v11  ;;  %v246_v20 = vmul.f32 %v728_v0, %v477_v12  ;;  %v247_v21 = vmul.f32 %v728_v0, %v478_v13  ;;  %v537_v11 = vld [vmem:[%s723_s28 + $0x58] sm:$0xff]   ;;  %p604_p13 = pneg %p603_p12 }
  0x1b   : > { %v276_v22 = vadd.f32 %v737_v5, %v240_v14  ;;  %v277_v23 = vadd.f32 %v737_v5, %v241_v15  ;;  %v278_v24 = vadd.f32 %v737_v5, %v242_v16  ;;  %v279_v25 = vadd.f32 %v737_v5, %v243_v17 }
  0x1c   : > { %v280_v26 = vadd.f32 %v737_v5, %v244_v18  ;;  %v281_v27 = vadd.f32 %v737_v5, %v245_v19  ;;  %v282_v28 = vadd.f32 %v737_v5, %v246_v20  ;;  %v283_v29 = vadd.f32 %v737_v5, %v247_v21 }
  0x1d   : > { %v308_v32 = vmax.f32 %v276_v22, 0.0  ;;  %v309_v33 = vmax.f32 %v277_v23, 0.0  ;;  %v310_v34 = vmax.f32 %v278_v24, 0.0  ;;  %v311_v35 = vmax.f32 %v279_v25, 0.0 }
  0x1e   : > { %v312_v38 = vmax.f32 %v280_v26, 0.0  ;;  %v313_v39 = vmax.f32 %v281_v27, 0.0  ;;  %v314_v40 = vmax.f32 %v282_v28, 0.0  ;;  %v315_v41 = vmax.f32 %v283_v29, 0.0 }
  0x1f   : > { %340 = vst [vmem:[%s762_s8] sm:$0xff] %v308_v32  ;;  %v481_v42 = vunpack.c.l.bf16 %v530_v30  ;;  %v482_v43 = vunpack.c.h.bf16 %v530_v30  ;;  %v485_v44 = vunpack.c.l.bf16 %v531_v31  ;;  %v486_v45 = vunpack.c.h.bf16 %v531_v31 }
  0x20   : > { %341 = vst [vmem:[%s762_s8 + $0x8] sm:$0xff] %v309_v33  ;;  %v489_v46 = vunpack.c.l.bf16 %v532_v36  ;;  %v490_v47 = vunpack.c.h.bf16 %v532_v36  ;;  %v493_v48 = vunpack.c.l.bf16 %v533_v37  ;;  %v494_v49 = vunpack.c.h.bf16 %v533_v37 }
  0x21   : > { %342 = vst [vmem:[%s762_s8 + $0x10] sm:$0xff] %v310_v34  ;;  %v248_v50 = vmul.f32 %v728_v0, %v481_v42  ;;  %v249_v51 = vmul.f32 %v728_v0, %v482_v43  ;;  %v250_v52 = vmul.f32 %v728_v0, %v485_v44  ;;  %v251_v53 = vmul.f32 %v728_v0, %v486_v45  ;;  %v540_v42 = vld [vmem:[%s723_s28 + $0x70] sm:$0xff]  }
  0x22   : > { %343 = vst [vmem:[%s762_s8 + $0x18] sm:$0xff] %v311_v35  ;;  %v252_v54 = vmul.f32 %v728_v0, %v489_v46  ;;  %v253_v55 = vmul.f32 %v728_v0, %v490_v47  ;;  %v254_v56 = vmul.f32 %v728_v0, %v493_v48  ;;  %v255_v57 = vmul.f32 %v728_v0, %v494_v49  ;;  %v541_v47 = vld [vmem:[%s723_s28 + $0x78] sm:$0xff]  }
  0x23   : > { %344 = vst [vmem:[%s762_s8 + $0x20] sm:$0xff] %v312_v38  ;;  %v284_v58 = vadd.f32 %v737_v5, %v248_v50  ;;  %v285_v59 = vadd.f32 %v737_v5, %v249_v51  ;;  %v286_v60 = vadd.f32 %v737_v5, %v250_v52  ;;  %v287_v61 = vadd.f32 %v737_v5, %v251_v53 }
  0x24   : > { %345 = vst [vmem:[%s762_s8 + $0x28] sm:$0xff] %v313_v39  ;;  %v288_v62 = vadd.f32 %v737_v5, %v252_v54  ;;  %v289_v63 = vadd.f32 %v737_v5, %v253_v55  ;;  %v290_v1 = vadd.f32 %v737_v5, %v254_v56  ;;  %v291_v2 = vadd.f32 %v737_v5, %v255_v57 }
  0x25   : > { %346 = vst [vmem:[%s762_s8 + $0x30] sm:$0xff] %v314_v40  ;;  %v316_v7 = vmax.f32 %v284_v58, 0.0  ;;  %v317_v8 = vmax.f32 %v285_v59, 0.0  ;;  %v318_v9 = vmax.f32 %v286_v60, 0.0  ;;  %v319_v10 = vmax.f32 %v287_v61, 0.0  ;;  %v538_v40 = vld [vmem:[%s723_s28 + $0x60] sm:$0xff]  }
  0x26   : > { %347 = vst [vmem:[%s762_s8 + $0x38] sm:$0xff] %v315_v41  ;;  %v320_v12 = vmax.f32 %v288_v62, 0.0  ;;  %v321_v13 = vmax.f32 %v289_v63, 0.0  ;;  %v322_v14 = vmax.f32 %v290_v1, 0.0  ;;  %v323_v15 = vmax.f32 %v291_v2, 0.0  ;;  %v539_v41 = vld [vmem:[%s723_s28 + $0x68] sm:$0xff]  }
  0x27   : > { %348 = vst [vmem:[%s762_s8 + $0x40] sm:$0xff] %v316_v7  ;;  %v497_v16 = vunpack.c.l.bf16 %v534_v3  ;;  %v498_v17 = vunpack.c.h.bf16 %v534_v3  ;;  %v501_v18 = vunpack.c.l.bf16 %v535_v4  ;;  %v502_v19 = vunpack.c.h.bf16 %v535_v4  ;;  %s605_s28 = scalar_lea.hbm %s889_s3, 1024 }
  0x28   : > { %349 = vst [vmem:[%s762_s8 + $0x48] sm:$0xff] %v317_v8  ;;  %v505_v20 = vunpack.c.l.bf16 %v536_v6  ;;  %v506_v21 = vunpack.c.h.bf16 %v536_v6  ;;  %v509_v22 = vunpack.c.l.bf16 %v537_v11  ;;  %v510_v23 = vunpack.c.h.bf16 %v537_v11  ;;  %p607_p1 = scmp.lt.s32.totalorder %s605_s28, %s601_s25 }
  0x29   : > { %350 = vst [vmem:[%s762_s8 + $0x50] sm:$0xff] %v318_v9  ;;  %v256_v24 = vmul.f32 %v728_v0, %v497_v16  ;;  %v257_v25 = vmul.f32 %v728_v0, %v498_v17  ;;  %v258_v26 = vmul.f32 %v728_v0, %v501_v18  ;;  %v259_v27 = vmul.f32 %v728_v0, %v502_v19 }
  0x2a   : > { %351 = vst [vmem:[%s762_s8 + $0x58] sm:$0xff] %v319_v10  ;;  %v260_v28 = vmul.f32 %v728_v0, %v505_v20  ;;  %v261_v29 = vmul.f32 %v728_v0, %v506_v21  ;;  %v262_v30 = vmul.f32 %v728_v0, %v509_v22  ;;  %v263_v31 = vmul.f32 %v728_v0, %v510_v23  ;;  %p608_p2 = por %p607_p1, %p606_p0 }
  0x2b   : > { %352 = vst [vmem:[%s762_s8 + $0x60] sm:$0xff] %v320_v12  ;;  %v292_v32 = vadd.f32 %v737_v5, %v256_v24  ;;  %v293_v33 = vadd.f32 %v737_v5, %v257_v25  ;;  %v294_v34 = vadd.f32 %v737_v5, %v258_v26  ;;  %v295_v35 = vadd.f32 %v737_v5, %v259_v27 }
  0x2c   : > { %353 = vst [vmem:[%s762_s8 + $0x68] sm:$0xff] %v321_v13  ;;  %v296_v36 = vadd.f32 %v737_v5, %v260_v28  ;;  %v297_v37 = vadd.f32 %v737_v5, %v261_v29  ;;  %v298_v38 = vadd.f32 %v737_v5, %v262_v30  ;;  %v299_v39 = vadd.f32 %v737_v5, %v263_v31  ;;  %p609_p3 = pnand %p608_p2, %p604_p13 }
  0x2d   : > { %354 = vst [vmem:[%s762_s8 + $0x70] sm:$0xff] %v322_v14  ;;  %v324_v43 = vmax.f32 %v292_v32, 0.0  ;;  %v325_v44 = vmax.f32 %v293_v33, 0.0  ;;  %v326_v45 = vmax.f32 %v294_v34, 0.0  ;;  %v327_v46 = vmax.f32 %v295_v35, 0.0 }
  0x2e   : > { %355 = vst [vmem:[%s762_s8 + $0x78] sm:$0xff] %v323_v15  ;;  %v328_v48 = vmax.f32 %v296_v36, 0.0  ;;  %v329_v49 = vmax.f32 %v297_v37, 0.0  ;;  %v330_v50 = vmax.f32 %v298_v38, 0.0  ;;  %v331_v51 = vmax.f32 %v299_v39, 0.0 }
  0x2f   : > { %356 = vst [vmem:[%s762_s8 + $0x80] sm:$0xff] %v324_v43  ;;  %v513_v52 = vunpack.c.l.bf16 %v538_v40  ;;  %v514_v53 = vunpack.c.h.bf16 %v538_v40  ;;  %v517_v54 = vunpack.c.l.bf16 %v539_v41  ;;  %v518_v55 = vunpack.c.h.bf16 %v539_v41 }
  0x30   : > { %357 = vst [vmem:[%s762_s8 + $0x88] sm:$0xff] %v325_v44  ;;  %v521_v56 = vunpack.c.l.bf16 %v540_v42  ;;  %v522_v57 = vunpack.c.h.bf16 %v540_v42  ;;  %v525_v58 = vunpack.c.l.bf16 %v541_v47  ;;  %v526_v59 = vunpack.c.h.bf16 %v541_v47 }
  0x31   : > { %358 = vst [vmem:[%s762_s8 + $0x90] sm:$0xff] %v326_v45  ;;  %v264_v60 = vmul.f32 %v728_v0, %v513_v52  ;;  %v265_v61 = vmul.f32 %v728_v0, %v514_v53  ;;  %v266_v62 = vmul.f32 %v728_v0, %v517_v54  ;;  %v267_v63 = vmul.f32 %v728_v0, %v518_v55 }
  0x32   : > { %359 = vst [vmem:[%s762_s8 + $0x98] sm:$0xff] %v327_v46  ;;  %v268_v1 = vmul.f32 %v728_v0, %v521_v56  ;;  %v269_v2 = vmul.f32 %v728_v0, %v522_v57  ;;  %v270_v3 = vmul.f32 %v728_v0, %v525_v58  ;;  %v271_v4 = vmul.f32 %v728_v0, %v526_v59 }
  0x33   : > { %360 = vst [vmem:[%s762_s8 + $0xa0] sm:$0xff] %v328_v48  ;;  %v300_v6 = vadd.f32 %v737_v5, %v264_v60  ;;  %v301_v7 = vadd.f32 %v737_v5, %v265_v61  ;;  %v302_v8 = vadd.f32 %v737_v5, %v266_v62  ;;  %v303_v9 = vadd.f32 %v737_v5, %v267_v63 }
  0x34   : > { %361 = vst [vmem:[%s762_s8 + $0xa8] sm:$0xff] %v329_v49  ;;  %v304_v10 = vadd.f32 %v737_v5, %v268_v1  ;;  %v305_v11 = vadd.f32 %v737_v5, %v269_v2  ;;  %v306_v14 = vadd.f32 %v737_v5, %v270_v3  ;;  %v307_v16 = vadd.f32 %v737_v5, %v271_v4 }
  0x35   : > { %362 = vst [vmem:[%s762_s8 + $0xb0] sm:$0xff] %v330_v50  ;;  %v332_v0 = vmax.f32 %v300_v6, 0.0  ;;  %v333_v12 = vmax.f32 %v301_v7, 0.0  ;;  %v334_v13 = vmax.f32 %v302_v8, 0.0  ;;  %v335_v15 = vmax.f32 %v303_v9, 0.0 }
  0x36   : > { %363 = vst [vmem:[%s762_s8 + $0xb8] sm:$0xff] %v331_v51  ;;  %v336_v17 = vmax.f32 %v304_v10, 0.0  ;;  %v337_v18 = vmax.f32 %v305_v11, 0.0  ;;  %v338_v19 = vmax.f32 %v306_v14, 0.0  ;;  %v339_v20 = vmax.f32 %v307_v16, 0.0 }
  0x37   : > { %364 = vst [vmem:[%s762_s8 + $0xc0] sm:$0xff] %v332_v0 }
  0x38   : > { %365 = vst [vmem:[%s762_s8 + $0xc8] sm:$0xff] %v333_v12 }
  0x39   : > { %366 = vst [vmem:[%s762_s8 + $0xd0] sm:$0xff] %v334_v13 }
  0x3a   : > { %367 = vst [vmem:[%s762_s8 + $0xd8] sm:$0xff] %v335_v15 }
  0x3b   : > { %368 = vst [vmem:[%s762_s8 + $0xe0] sm:$0xff] %v336_v17 }
  0x3c   : > { %369 = vst [vmem:[%s762_s8 + $0xe8] sm:$0xff] %v337_v18 }
  0x3d   : > { %370 = vst [vmem:[%s762_s8 + $0xf0] sm:$0xff] %v338_v19 }
  0x3e   : > { %371 = vst [vmem:[%s762_s8 + $0xf8] sm:$0xff] %v339_v20 }
  0x3f   : > { %612 = shalt.err (!%p609_p3)
}
  0x40   : > { %s649_s4 = smov 128   ;;  %s650_s5 = smov 8  }
  0x41   : > { %542 = dma.vmem_to_hbm [thread:$0]  (%p709_p5), %s386_s17, 4096, %s388_s19, %s373_s20, %s649_s4, %s649_s4, %s650_s5  }
  0x42 PF: > { %p548_p4 = scmp.ge.s32.totalorder %s647_s15, 2  ;;  %s402_s6 = sand.u32 1, %s635_s12  }
  0x43   : > { %s403_s7 = scalar_lea.sflag [#allocation3], %s402_s6 }
  0x44   : > { %p545_p7 = pnand %p548_p4, %p713_p6 }
  0x46   : > { %p546_p8 = pneg %p545_p7 }
  0x48   : > { %630 = dma.done.wait (%p546_p8), %s403_s7, 4096  }
  0x49   : > { %632 = vsyncadd (%p546_p8), %s403_s7, 4294963200  ;;  %p13_p9 = scmp.ge.s32.totalorder %s696_s18, 6   ;;  %s892_s12 = smov %s639_s13 }
  0x4a   : > { %s893_s13 = smov %s643_s14  ;;  %s894_s14 = smov %s707_s21 }
  0x4b   : > { %s895_s15 = smov %s696_s18  ;;  %15 = sbr.rel (!%p13_p9) target bundleno = 3 (0x3), region = 67 }
  0x50   :  { %409 = vsyncpa [#allocation3], 1 }
  0x51   :  { %411 = vsyncpa [#allocation3 + $0x1], 1 }

// kernel: affnet_stem.6
= control target key start
LH: loop header
LB: loop body
LE: loop exit
PB: predicated region body
PF: predicated region fallthrough
CT: control target
= control target key end

     0   :  { %s2210_s12 = smov 0   ;;  %s2212_s13 = smov 0   ;;  %s2533_s0 = inlined_call_operand.vmem [shape: bf16[1024,448], index: 0, kind: input, shape index: {}]   ;;  %s2534_s1 = inlined_call_operand.vmem [shape: bf16[448,128], index: 1, kind: input, shape index: {}]   ;;  %s2535_s2 = inlined_call_operand.vmem [shape: bf16[1024,128], index: 2, kind: output, shape index: {0}]   ;;  %s2536_s3 = inlined_call_operand.vmem [shape: f32[16,128], index: 3, kind: output, shape index: {1}]  }
   0x1   :  { %s2214_s14 = smov 0   ;;  %s2216_s15 = smov 0  }
   0x2   :  { %s2218_s16 = smov 0  }
   0x3 LB: > { %s23_s17 = sadd.s32 1, %s2179_s14  ;;  %s26_s18 = sadd.s32 1, %s2183_s15  ;;  %s2187_s16 = sphi %s2218_s16, %s14_s16   ;;  %s2183_s15 = sphi %s2216_s15, %s2540_s15   ;;  %s2179_s14 = sphi %s2214_s14, %s2539_s14   ;;  %s2175_s13 = sphi %s2212_s13, %s2538_s13   ;;  %s2171_s12 = sphi %s2210_s12, %s2537_s12  }
   0x4   : > { %p24_p0 = scmp.ge.s32.totalorder %s23_s17, 2  ;;  %p1524_p1 = scmp.ge.s32.totalorder %s2187_s16, 1 }
   0x5   : > { %p166_p2 = scmp.lt.s32.totalorder %s2187_s16, 5 }
   0x6   : > { %s2542_s17 = smov (%p24_p0, %s23_s17), 0  ;;  %s2544_s18 = smov (!%p24_p0, %s26_s18), %s2183_s15 }
   0x7   : > { %p167_p3 = pnand %p1524_p1, %p166_p2  ;;  %p28_p4 = scmp.ge.s32.totalorder %s2544_s18, 2 }
   0x8   : > { %s1525_s19 = sshll.u32 (!%p167_p3), %s2175_s13, 1  ;;  %p220_p5 = scmp.lt.s32.totalorder (!%p167_p3), %s2175_s13, 1 }
   0x9   : > { %s2546_s18 = smov (%p28_p4, %s2544_s18), 0  ;;  %170 = sbr.rel (%p167_p3) target bundleno = 465 (0x1d1), region = 28 }
   0xa   : > { %s200_s20 = sadd.s32 (!%p167_p3), %s2171_s12, %s1525_s19  ;;  %p1533_p7 = scmp.ne.s32.totalorder (!%p167_p3), %s2171_s12, 0 }
   0xb   : > { %s1526_s21 = sshll.u32 (!%p167_p3), %s200_s20, 5 }
   0xc   : > { %p202_p6 = scmp.lt.s32.totalorder (!%p167_p3), %s1526_s21, 127 }
   0xe   : > { %s2548_s13 = smov (!%p220_p5, %s2175_s13), 1  ;;  %s2550_s21 = smov (!%p202_p6, %s1526_s21), 127 }
   0xf   : > { %s1532_s22 = sshll.u32 %s2548_s13, 3  ;;  %s1920_s23 = sshll.u32 %s2550_s21, 4 }
  0x10   : > { %s1531_s24 = sshll.u32 %s2550_s21, 2  ;;  %s2246_s27 = scalar_lea.vmem %s2533_s0, %s1920_s23 }
  0x11   : > { %s2251_s30 = scalar_lea.vmem %s2535_s2, %s1531_s24  ;;  %s2256_s6 = scalar_lea.vmem %s2536_s3, %s1532_s22 }
  0x12   : > { %228 = sbr.rel (%p1533_p7) target bundleno = 25 (0x19), region = 32 }
  0x17   : > { %v2189_v0 = vmov 0.0  }
  0x18   : > { %229 = vst [vmem:[%s2256_s6] sm:$0xff] %v2189_v0 }
  0x19 PF: > { %v1992_v1 = vld [vmem:[%s2534_s1 + $0x38] sm:$0xff]  ;;  %v1991_v4 = vld [vmem:[%s2534_s1 + $0x30] sm:$0xff]  ;;  %v1990_v9 = vld [vmem:[%s2534_s1 + $0x28] sm:$0xff]  ;;  %vm822_vm0 = vcmask 523264  }
  0x1a   : > { %v2000_v2 = vld [vmem:[%s2534_s1 + $0x78] sm:$0xff]  ;;  %871 = vmatpush.bf16.msra.mxu0 %v1992_v1  ;;  %v1999_v5 = vld [vmem:[%s2534_s1 + $0x70] sm:$0xff]  ;;  %v1998_v10 = vld [vmem:[%s2534_s1 + $0x68] sm:$0xff] }
  0x1b   : > { %v2008_v3 = vld [vmem:[%s2534_s1 + $0xb8] sm:$0xff]  ;;  %960 = vmatpush.bf16.msra.mxu1 %v2000_v2  ;;  %v2007_v6 = vld [vmem:[%s2534_s1 + $0xb0] sm:$0xff]  ;;  %v2006_v11 = vld [vmem:[%s2534_s1 + $0xa8] sm:$0xff] }
  0x1c   : > { %1049 = vmatpush.bf16.msra.mxu2 %v2008_v3  ;;  %v2012_v7 = vld [vmem:[%s2534_s1 + $0xd8] sm:$0xff]  ;;  %v2011_v8 = vld [vmem:[%s2534_s1 + $0xd0] sm:$0xff]  ;;  %v2010_v12 = vld [vmem:[%s2534_s1 + $0xc8] sm:$0xff] }
  0x1d   : > { %1142 = vmatpush.bf16.msra.mxu3 %v2012_v7  ;;  %v1989_v13 = vld [vmem:[%s2534_s1 + $0x20] sm:$0xff]  ;;  %v1922_v17 = vld [vmem:[%s2246_s27 + $0xc] sm:$0xf]  ;;  %v1546_v18 = vld [vmem:[%s2246_s27 + $0x18] sm:$0xf0] }
  0x1e   : > { %872 = vmatpush.bf16.msra.mxu0 %v1991_v4  ;;  %v1997_v14 = vld [vmem:[%s2534_s1 + $0x60] sm:$0xff]  ;;  %v1988_v19 = vld [vmem:[%s2534_s1 + $0x18] sm:$0xff]  ;;  %v1549_v22 = vor.u32 %v1922_v17, %v1546_v18  ;;  %v1987_v23 = vld [vmem:[%s2534_s1 + $0x10] sm:$0xff] }
  0x1f   : > { %961 = vmatpush.bf16.msra.mxu1 %v1999_v5  ;;  %v2005_v15 = vld [vmem:[%s2534_s1 + $0xa0] sm:$0xff]  ;;  %v1996_v20 = vld [vmem:[%s2534_s1 + $0x58] sm:$0xff]  ;;  %v1995_v24 = vld [vmem:[%s2534_s1 + $0x50] sm:$0xff] }
  0x20   : > { %1050 = vmatpush.bf16.msra.mxu2 %v2007_v6  ;;  %v2009_v16 = vld [vmem:[%s2534_s1 + $0xc0] sm:$0xff]  ;;  %v2004_v21 = vld [vmem:[%s2534_s1 + $0x98] sm:$0xff]  ;;  %v2003_v25 = vld [vmem:[%s2534_s1 + $0x90] sm:$0xff] }
  0x21   : > { %1143 = vmatpush.bf16.msra.mxu3 %v2011_v8  ;;  %v1986_v26 = vld [vmem:[%s2534_s1 + $0x8] sm:$0xff]  ;;  %v1985_v29 = vld [vmem:[%s2534_s1] sm:$0xff]  ;;  %v1923_v32 = vld [vmem:[%s2246_s27 + $0xc] sm:$0xf0] }
  0x22   : > { %873 = vmatpush.bf16.msra.mxu0 %v1990_v9  ;;  %v1994_v27 = vld [vmem:[%s2534_s1 + $0x48] sm:$0xff]  ;;  %v1993_v30 = vld [vmem:[%s2534_s1 + $0x40] sm:$0xff]  ;;  %v1538_v34 = vld [vmem:[%s2246_s27 + $0x10] sm:$0xf0] }
  0x23   : > { %962 = vmatpush.bf16.msra.mxu1 %v1998_v10  ;;  %v2002_v28 = vld [vmem:[%s2534_s1 + $0x88] sm:$0xff]  ;;  %v1536_v31 = vld [vmem:[%s2246_s27] sm:$0xf]  ;;  %v1921_v33 = vld [vmem:[%s2246_s27 + $0x4] sm:$0xf] }
  0x24   : > { %1051 = vmatpush.bf16.msra.mxu2 %v2006_v11  ;;  %v2001_v35 = vld [vmem:[%s2534_s1 + $0x80] sm:$0xff]  ;;  %v1544_v36 = vld [vmem:[%s2246_s27 + $0x8] sm:$0xf]  ;;  %v1924_v37 = vld [vmem:[%s2246_s27 + $0x14] sm:$0xf0]  ;;  %v1537_v38 = vor.u32 %v1923_v32, %v1536_v31  ;;  %v1541_v39 = vor.u32 %v1921_v33, %v1538_v34 }
  0x25   : > { %1144 = vmatpush.bf16.msra.mxu3 %v2010_v12  ;;  %v1926_v40 = vld [vmem:[%s2246_s27 + $0x2c] sm:$0xf]  ;;  %v1562_v41 = vld [vmem:[%s2246_s27 + $0x38] sm:$0xf0]  ;;  %v1545_v42 = vor.u32 %v1924_v37, %v1544_v36  ;;  %v1552_v44 = vld [vmem:[%s2246_s27 + $0x20] sm:$0xf] }
  0x26   : > { %874 = vmatpush.bf16.msra.mxu0 %v1989_v13  ;;  %v1565_v43 = vor.u32 %v1926_v40, %v1562_v41  ;;  %v1927_v45 = vld [vmem:[%s2246_s27 + $0x2c] sm:$0xf0]  ;;  %v1925_v46 = vld [vmem:[%s2246_s27 + $0x24] sm:$0xf]  ;;  %v1554_v47 = vld [vmem:[%s2246_s27 + $0x30] sm:$0xf0] }
  0x27   : > { %963 = vmatpush.bf16.msra.mxu1 %v1997_v14  ;;  %v1560_v48 = vld [vmem:[%s2246_s27 + $0x28] sm:$0xf]  ;;  %v1928_v49 = vld [vmem:[%s2246_s27 + $0x34] sm:$0xf0]  ;;  %v1553_v50 = vor.u32 %v1927_v45, %v1552_v44  ;;  %v1557_v51 = vor.u32 %v1925_v46, %v1554_v47  ;;  %v1930_v52 = vld [vmem:[%s2246_s27 + $0x4c] sm:$0xf] }
  0x28   : > { %1052 = vmatpush.bf16.msra.mxu2 %v2005_v15  ;;  %v1578_v53 = vld [vmem:[%s2246_s27 + $0x58] sm:$0xf0]  ;;  %v1561_v54 = vor.u32 %v1928_v49, %v1560_v48  ;;  %v1568_v56 = vld [vmem:[%s2246_s27 + $0x40] sm:$0xf]  ;;  %v1931_v57 = vld [vmem:[%s2246_s27 + $0x4c] sm:$0xf0] }
  0x29   : > { %1145 = vmatpush.bf16.msra.mxu3 %v2009_v16  ;;  %v1581_v55 = vor.u32 %v1930_v52, %v1578_v53  ;;  %v1929_v58 = vld [vmem:[%s2246_s27 + $0x44] sm:$0xf]  ;;  %v1570_v59 = vld [vmem:[%s2246_s27 + $0x50] sm:$0xf0]  ;;  %v1576_v60 = vld [vmem:[%s2246_s27 + $0x48] sm:$0xf]  ;;  %v1569_v62 = vor.u32 %v1931_v57, %v1568_v56 }
  0x2a   : > { %875 = vmatpush.bf16.msra.mxu0 %v1988_v19  ;;  %v1932_v61 = vld [vmem:[%s2246_s27 + $0x54] sm:$0xf0]  ;;  %v1573_v63 = vor.u32 %v1929_v58, %v1570_v59  ;;  %v1934_v0 = vld [vmem:[%s2246_s27 + $0x6c] sm:$0xf]  ;;  %v1594_v1 = vld [vmem:[%s2246_s27 + $0x78] sm:$0xf0] }
  0x2b   : > { %964 = vmatpush.bf16.msra.mxu1 %v1996_v20  ;;  %v1577_v2 = vor.u32 %v1932_v61, %v1576_v60  ;;  %v1597_v3 = vor.u32 %v1934_v0, %v1594_v1  ;;  %v1584_v4 = vld [vmem:[%s2246_s27 + $0x60] sm:$0xf]  ;;  %v1935_v5 = vld [vmem:[%s2246_s27 + $0x6c] sm:$0xf0]  ;;  %v1933_v6 = vld [vmem:[%s2246_s27 + $0x64] sm:$0xf] }
  0x2c   : > { %1053 = vmatpush.bf16.msra.mxu2 %v2004_v21  ;;  %1902 = vmatmul.msk.bf16.vlgmr.msra.gmra.mxu3 %vm822_vm0, %v1549_v22  ;;  %v1586_v7 = vld [vmem:[%s2246_s27 + $0x70] sm:$0xf0]  ;;  %v1592_v8 = vld [vmem:[%s2246_s27 + $0x68] sm:$0xf]  ;;  %v1936_v9 = vld [vmem:[%s2246_s27 + $0x74] sm:$0xf0]  ;;  %v1585_v10 = vor.u32 %v1935_v5, %v1584_v4 }
  0x2d   : > { %v1589_v11 = vor.u32 %v1933_v6, %v1586_v7  ;;  %v1938_v12 = vld [vmem:[%s2246_s27 + $0x8c] sm:$0xf]  ;;  %v1610_v13 = vld [vmem:[%s2246_s27 + $0x98] sm:$0xf0]  ;;  %v1593_v14 = vor.u32 %v1936_v9, %v1592_v8  ;;  %v1600_v16 = vld [vmem:[%s2246_s27 + $0x80] sm:$0xf] }
  0x2e   : > { %876 = vmatpush.bf16.msra.mxu0 %v1987_v23  ;;  %v1613_v15 = vor.u32 %v1938_v12, %v1610_v13  ;;  %v1939_v17 = vld [vmem:[%s2246_s27 + $0x8c] sm:$0xf0]  ;;  %v1937_v18 = vld [vmem:[%s2246_s27 + $0x84] sm:$0xf]  ;;  %v1602_v19 = vld [vmem:[%s2246_s27 + $0x90] sm:$0xf0] }
  0x2f   : > { %965 = vmatpush.bf16.msra.mxu1 %v1995_v24  ;;  %v1608_v20 = vld [vmem:[%s2246_s27 + $0x88] sm:$0xf]  ;;  %v1940_v21 = vld [vmem:[%s2246_s27 + $0x94] sm:$0xf0]  ;;  %v1601_v22 = vor.u32 %v1939_v17, %v1600_v16  ;;  %v1605_v23 = vor.u32 %v1937_v18, %v1602_v19  ;;  %v1942_v24 = vld [vmem:[%s2246_s27 + $0xac] sm:$0xf] }
  0x30   : > { %1054 = vmatpush.bf16.msra.mxu2 %v2003_v25  ;;  %v1626_v25 = vld [vmem:[%s2246_s27 + $0xb8] sm:$0xf0]  ;;  %v1618_v31 = vld [vmem:[%s2246_s27 + $0xb0] sm:$0xf0]  ;;  %v1624_v32 = vld [vmem:[%s2246_s27 + $0xa8] sm:$0xf] }
  0x31   : > { %v1944_v33 = vld [vmem:[%s2246_s27 + $0xb4] sm:$0xf0]  ;;  %v1946_v36 = vld [vmem:[%s2246_s27 + $0xcc] sm:$0xf]  ;;  %v1642_v37 = vld [vmem:[%s2246_s27 + $0xd8] sm:$0xf0] }
  0x32   : > { %877 = vmatpush.bf16.msra.mxu0 %v1986_v26  ;;  %v1609_v26 = vor.u32 %v1940_v21, %v1608_v20  ;;  %v1632_v40 = vld [vmem:[%s2246_s27 + $0xc0] sm:$0xf]  ;;  %v1947_v41 = vld [vmem:[%s2246_s27 + $0xcc] sm:$0xf0]  ;;  %v1640_v44 = vld [vmem:[%s2246_s27 + $0xc8] sm:$0xf] }
  0x33   : > { %966 = vmatpush.bf16.msra.mxu1 %v1994_v27  ;;  %v1629_v27 = vor.u32 %v1942_v24, %v1626_v25  ;;  %v1948_v45 = vld [vmem:[%s2246_s27 + $0xd4] sm:$0xf0]  ;;  %v1633_v46 = vor.u32 %v1947_v41, %v1632_v40  ;;  %v1950_v48 = vld [vmem:[%s2246_s27 + $0xec] sm:$0xf]  ;;  %v1658_v49 = vld [vmem:[%s2246_s27 + $0xf8] sm:$0xf0] }
  0x34   : > { %1055 = vmatpush.bf16.msra.mxu2 %v2002_v28  ;;  %v1616_v28 = vld [vmem:[%s2246_s27 + $0xa0] sm:$0xf]  ;;  %v1951_v53 = vld [vmem:[%s2246_s27 + $0xec] sm:$0xf0]  ;;  %v1656_v56 = vld [vmem:[%s2246_s27 + $0xe8] sm:$0xf] }
  0x35   : > { %v1648_v52 = vld [vmem:[%s2246_s27 + $0xe0] sm:$0xf]  ;;  %v1952_v57 = vld [vmem:[%s2246_s27 + $0xf4] sm:$0xf0]  ;;  %v1954_v60 = vld [vmem:[%s2246_s27 + $0x10c] sm:$0xf] }
  0x36   : > { %878 = vmatpush.bf16.msra.mxu0 %v1985_v29  ;;  %v1943_v29 = vld [vmem:[%s2246_s27 + $0xac] sm:$0xf0]  ;;  %v1649_v58 = vor.u32 %v1951_v53, %v1648_v52  ;;  %v1674_v61 = vld [vmem:[%s2246_s27 + $0x118] sm:$0xf0]  ;;  %v1664_v1 = vld [vmem:[%s2246_s27 + $0x100] sm:$0xf] }
  0x37   : > { %967 = vmatpush.bf16.msra.mxu1 %v1993_v30  ;;  %v1941_v30 = vld [vmem:[%s2246_s27 + $0xa4] sm:$0xf]  ;;  %v1617_v34 = vor.u32 %v1943_v29, %v1616_v28  ;;  %v1666_v4 = vld [vmem:[%s2246_s27 + $0x110] sm:$0xf0]  ;;  %v1672_v5 = vld [vmem:[%s2246_s27 + $0x108] sm:$0xf] }
  0x38   : > { %1056 = vmatpush.bf16.msra.mxu2 %v2001_v35  ;;  %v1621_v35 = vor.u32 %v1941_v30, %v1618_v31  ;;  %v1956_v6 = vld [vmem:[%s2246_s27 + $0x114] sm:$0xf0]  ;;  %v1958_v9 = vld [vmem:[%s2246_s27 + $0x12c] sm:$0xf]  ;;  %v1957_v24 = vld [vmem:[%s2246_s27 + $0x124] sm:$0xf] }
  0x39   : > { %879 = vmatmul.bf16.vlgmr.msra.gmra.mxu0 %v1537_v38  ;;  %v1625_v38 = vor.u32 %v1944_v33, %v1624_v32  ;;  %v1673_v13 = vor.u32 %v1956_v6, %v1672_v5  ;;  %v1682_v25 = vld [vmem:[%s2246_s27 + $0x130] sm:$0xf0]  ;;  %v1962_v33 = vld [vmem:[%s2246_s27 + $0x14c] sm:$0xf] }
  0x3a   : > { %968 = vmatmul.bf16.vlgmr.msra.gmra.mxu1 %v1541_v39  ;;  %v1645_v39 = vor.u32 %v1946_v36, %v1642_v37  ;;  %v1685_v32 = vor.u32 %v1957_v24, %v1682_v25 }
  0x3b   : > { %1057 = vmatmul.bf16.vlgmr.msra.gmra.mxu2 %v1545_v42  ;;  %v1945_v42 = vld [vmem:[%s2246_s27 + $0xc4] sm:$0xf] }
  0x3c   : > { %1903 = vmatmul.msk.bf16.gmra.mxu3 %vm822_vm0, %v1565_v43  ;;  %v1634_v43 = vld [vmem:[%s2246_s27 + $0xd0] sm:$0xf0] }
  0x3d   : > { %v1637_v47 = vor.u32 %v1945_v42, %v1634_v43 }
  0x49   : > { %884 = vmatmul.bf16.gmra.mxu0 %v1553_v50  ;;  %v1641_v50 = vor.u32 %v1948_v45, %v1640_v44 }
  0x4a   : > { %973 = vmatmul.bf16.gmra.mxu1 %v1557_v51  ;;  %v1661_v51 = vor.u32 %v1950_v48, %v1658_v49 }
  0x4b   : > { %1062 = vmatmul.bf16.gmra.mxu2 %v1561_v54  ;;  %v1949_v54 = vld [vmem:[%s2246_s27 + $0xe4] sm:$0xf] }
  0x4c   : > { %1904 = vmatmul.msk.bf16.gmra.mxu3 %vm822_vm0, %v1581_v55  ;;  %v1650_v55 = vld [vmem:[%s2246_s27 + $0xf0] sm:$0xf0] }
  0x4d   : > { %v1653_v59 = vor.u32 %v1949_v54, %v1650_v55  ;;  %v1696_v54 = vld [vmem:[%s2246_s27 + $0x140] sm:$0xf] }
  0x59   : > { %889 = vmatmul.bf16.gmra.mxu0 %v1569_v62  ;;  %v1657_v62 = vor.u32 %v1952_v57, %v1656_v56  ;;  %v1963_v57 = vld [vmem:[%s2246_s27 + $0x14c] sm:$0xf0] }
  0x5a   : > { %978 = vmatmul.bf16.gmra.mxu1 %v1573_v63  ;;  %v1677_v63 = vor.u32 %v1954_v60, %v1674_v61  ;;  %v1704_v60 = vld [vmem:[%s2246_s27 + $0x148] sm:$0xf]  ;;  %v1964_v61 = vld [vmem:[%s2246_s27 + $0x154] sm:$0xf0] }
  0x5b   : > { %1067 = vmatmul.bf16.gmra.mxu2 %v1577_v2  ;;  %v1955_v2 = vld [vmem:[%s2246_s27 + $0x10c] sm:$0xf0] }
  0x5c   : > { %1905 = vmatmul.msk.bf16.gmra.mxu3 %vm822_vm0, %v1597_v3  ;;  %v1953_v3 = vld [vmem:[%s2246_s27 + $0x104] sm:$0xf]  ;;  %v1665_v7 = vor.u32 %v1955_v2, %v1664_v1  ;;  %v1697_v1 = vor.u32 %v1963_v57, %v1696_v54 }
  0x5d   : > { %v1669_v8 = vor.u32 %v1953_v3, %v1666_v4  ;;  %v1966_v3 = vld [vmem:[%s2246_s27 + $0x16c] sm:$0xf]  ;;  %v1722_v4 = vld [vmem:[%s2246_s27 + $0x178] sm:$0xf0] }
  0x69   : > { %894 = vmatmul.bf16.gmra.mxu0 %v1585_v10  ;;  %v1690_v10 = vld [vmem:[%s2246_s27 + $0x138] sm:$0xf0] }
  0x6a   : > { %983 = vmatmul.bf16.gmra.mxu1 %v1589_v11 }
  0x6b   : > { %1072 = vmatmul.bf16.gmra.mxu2 %v1593_v14 }
  0x6c   : > { %1906 = vmatmul.msk.bf16.gmra.mxu3 %vm822_vm0, %v1613_v15  ;;  %v1693_v15 = vor.u32 %v1958_v9, %v1690_v10 }
  0x79   : > { %899 = vmatmul.bf16.gmra.mxu0 %v1601_v22  ;;  %v1680_v22 = vld [vmem:[%s2246_s27 + $0x120] sm:$0xf] }
  0x7a   : > { %988 = vmatmul.bf16.gmra.mxu1 %v1605_v23  ;;  %v1959_v23 = vld [vmem:[%s2246_s27 + $0x12c] sm:$0xf0] }
  0x7b   : > { %1077 = vmatmul.bf16.gmra.mxu2 %v1609_v26  ;;  %v1688_v26 = vld [vmem:[%s2246_s27 + $0x128] sm:$0xf]  ;;  %v1681_v31 = vor.u32 %v1959_v23, %v1680_v22  ;;  %v1712_v23 = vld [vmem:[%s2246_s27 + $0x160] sm:$0xf] }
  0x7c   : > { %1907 = vmatmul.msk.bf16.gmra.mxu3 %vm822_vm0, %v1629_v27  ;;  %v1960_v27 = vld [vmem:[%s2246_s27 + $0x134] sm:$0xf0] }
  0x89   : > { %904 = vmatmul.bf16.gmra.mxu0 %v1617_v34  ;;  %v1706_v34 = vld [vmem:[%s2246_s27 + $0x158] sm:$0xf0] }
  0x8a   : > { %993 = vmatmul.bf16.gmra.mxu1 %v1621_v35  ;;  %v1709_v41 = vor.u32 %v1962_v33, %v1706_v34 }
  0x8b   : > { %1082 = vmatmul.bf16.gmra.mxu2 %v1625_v38  ;;  %v1689_v38 = vor.u32 %v1960_v27, %v1688_v26  ;;  %v1967_v26 = vld [vmem:[%s2246_s27 + $0x16c] sm:$0xf0]  ;;  %v1965_v27 = vld [vmem:[%s2246_s27 + $0x164] sm:$0xf] }
  0x8c   : > { %1908 = vmatmul.msk.bf16.gmra.mxu3 %vm822_vm0, %v1645_v39  ;;  %v1713_v34 = vor.u32 %v1967_v26, %v1712_v23 }
  0x99   : > { %909 = vmatmul.bf16.gmra.mxu0 %v1633_v46 }
  0x9a   : > { %998 = vmatmul.bf16.gmra.mxu1 %v1637_v47 }
  0x9b   : > { %1087 = vmatmul.bf16.gmra.mxu2 %v1641_v50 }
  0x9c   : > { %1909 = vmatmul.msk.bf16.gmra.mxu3 %vm822_vm0, %v1661_v51 }
  0xa9   : > { %914 = vmatmul.bf16.gmra.mxu0 %v1649_v58  ;;  %v1961_v58 = vld [vmem:[%s2246_s27 + $0x144] sm:$0xf] }
  0xaa   : > { %1003 = vmatmul.bf16.gmra.mxu1 %v1653_v59  ;;  %v1698_v59 = vld [vmem:[%s2246_s27 + $0x150] sm:$0xf0] }
  0xab   : > { %1092 = vmatmul.bf16.gmra.mxu2 %v1657_v62  ;;  %v1701_v2 = vor.u32 %v1961_v58, %v1698_v59  ;;  %v1971_v59 = vld [vmem:[%s2246_s27 + $0x18c] sm:$0xf0] }
  0xac   : > { %1910 = vmatmul.msk.bf16.gmra.mxu3 %vm822_vm0, %v1677_v63 }
  0xaf   : > { %v1147_v0 = vpop.f32.mrf.mxu3 }
  0xb6   : > { %v880_v11 = vpop.f32.mrf.mxu0 }
  0xb7   : > { %v969_v12 = vpop.f32.mrf.mxu1  ;;  %v1149_v14 = vpop.f32.mrf.mxu3 }
  0xb8   : > { %v970_v16 = vadd.f32 %v969_v12, %v880_v11  ;;  %v1725_v11 = vor.u32 %v1966_v3, %v1722_v4 }
  0xb9   : > { %919 = vmatmul.bf16.gmra.mxu0 %v1665_v7 }
  0xba   : > { %1008 = vmatmul.bf16.gmra.mxu1 %v1669_v8  ;;  %v1705_v8 = vor.u32 %v1964_v61, %v1704_v60  ;;  %v1969_v60 = vld [vmem:[%s2246_s27 + $0x184] sm:$0xf]  ;;  %v1730_v61 = vld [vmem:[%s2246_s27 + $0x190] sm:$0xf0] }
  0xbb   : > { %1097 = vmatmul.bf16.gmra.mxu2 %v1673_v13  ;;  %v1733_v4 = vor.u32 %v1969_v60, %v1730_v61  ;;  %v1979_v61 = vld [vmem:[%s2246_s27 + $0x1cc] sm:$0xf0] }
  0xbc   : > { %1911 = vmatmul.msk.bf16.gmra.mxu3 %vm822_vm0, %v1693_v15 }
  0xbe   : > { %v1058_v17 = vpop.f32.mrf.mxu2  ;;  %v882_v18 = vpop.f32.mrf.mxu0 }
  0xbf   : > { %v971_v19 = vpop.f32.mrf.mxu1  ;;  %v1152_v20 = vpop.f32.mrf.mxu3  ;;  %v1059_v21 = vadd.f32 %v1058_v17, %v970_v16 }
  0xc0   : > { %v972_v28 = vadd.f32 %v971_v19, %v882_v18 }
  0xc1   : > { %v1148_v29 = vadd.f32 %v1147_v0, %v1059_v21 }
  0xc3   : > { %v1328_v42 = vmul.f32 %v1148_v29, %v1148_v29 }
  0xc6   : > { %v1060_v30 = vpop.f32.mrf.mxu2  ;;  %v885_v36 = vpop.f32.mrf.mxu0 }
  0xc7   : > { %v1061_v35 = vadd.f32 %v1060_v30, %v972_v28  ;;  %v974_v37 = vpop.f32.mrf.mxu1  ;;  %v1154_v39 = vpop.f32.mrf.mxu3  ;;  %v1714_v28 = vld [vmem:[%s2246_s27 + $0x170] sm:$0xf0]  ;;  %v1968_v30 = vld [vmem:[%s2246_s27 + $0x174] sm:$0xf0] }
  0xc8   : > { %v975_v46 = vadd.f32 %v974_v37, %v885_v36  ;;  %v1970_v36 = vld [vmem:[%s2246_s27 + $0x18c] sm:$0xf]  ;;  %v1738_v37 = vld [vmem:[%s2246_s27 + $0x198] sm:$0xf0] }
  0xc9   : > { %v1150_v40 = vadd.f32 %v1149_v14, %v1061_v35  ;;  %924 = vmatmul.bf16.gmra.mxu0 %v1681_v31  ;;  %v1717_v35 = vor.u32 %v1965_v27, %v1714_v28  ;;  %v1975_v28 = vld [vmem:[%s2246_s27 + $0x1ac] sm:$0xf0] }
  0xca   : > { %1013 = vmatmul.bf16.gmra.mxu1 %v1685_v32 }
  0xcb   : > { %v2016_v43 = vpack.c.bf16 %v1150_v40, %v1148_v29  ;;  %v1291_v44 = vadd.f32 %v1150_v40, %v1148_v29  ;;  %v1329_v45 = vmul.f32 %v1150_v40, %v1150_v40  ;;  %1102 = vmatmul.bf16.gmra.mxu2 %v1689_v38  ;;  %v1720_v29 = vld [vmem:[%s2246_s27 + $0x168] sm:$0xf] }
  0xcc   : > { %1912 = vmatmul.msk.bf16.gmra.mxu3 %vm822_vm0, %v1709_v41  ;;  %v1721_v41 = vor.u32 %v1968_v30, %v1720_v29  ;;  %v1973_v29 = vld [vmem:[%s2246_s27 + $0x1a4] sm:$0xf]  ;;  %v1746_v30 = vld [vmem:[%s2246_s27 + $0x1b0] sm:$0xf0] }
  0xcd   : > { %2017 = vst [vmem:[%s2251_s30] sm:$0xff] %v2016_v43   ;;  %v1360_v47 = vadd.f32 %v1329_v45, %v1328_v42 }
  0xce   : > { %v1063_v48 = vpop.f32.mrf.mxu2  ;;  %v887_v50 = vpop.f32.mrf.mxu0 }
  0xcf   : > { %v1064_v49 = vadd.f32 %v1063_v48, %v975_v46  ;;  %v976_v51 = vpop.f32.mrf.mxu1  ;;  %v1157_v52 = vpop.f32.mrf.mxu3 }
  0xd0   : > { %v977_v63 = vadd.f32 %v976_v51, %v887_v50 }
  0xd1   : > { %v1153_v53 = vadd.f32 %v1152_v20, %v1064_v49 }
  0xd3   : > { %v1292_v55 = vadd.f32 %v1291_v44, %v1153_v53  ;;  %v1330_v56 = vmul.f32 %v1153_v53, %v1153_v53  ;;  %v1741_v44 = vor.u32 %v1970_v36, %v1738_v37  ;;  %v1749_v37 = vor.u32 %v1973_v29, %v1746_v30  ;;  %v1983_v30 = vld [vmem:[%s2246_s27 + $0x1ec] sm:$0xf0] }
  0xd5   : > { %v1361_v62 = vadd.f32 %v1360_v47, %v1330_v56  ;;  %v1728_v56 = vld [vmem:[%s2246_s27 + $0x180] sm:$0xf] }
  0xd6   : > { %v1065_v0 = vpop.f32.mrf.mxu2  ;;  %v890_v6 = vpop.f32.mrf.mxu0  ;;  %v1729_v3 = vor.u32 %v1971_v59, %v1728_v56 }
  0xd7   : > { %v1066_v5 = vadd.f32 %v1065_v0, %v977_v63  ;;  %v979_v7 = vpop.f32.mrf.mxu1  ;;  %v1159_v9 = vpop.f32.mrf.mxu3  ;;  %v1972_v63 = vld [vmem:[%s2246_s27 + $0x194] sm:$0xf0] }
  0xd8   : > { %v980_v15 = vadd.f32 %v979_v7, %v890_v6  ;;  %v1754_v6 = vld [vmem:[%s2246_s27 + $0x1b8] sm:$0xf0] }
  0xd9   : > { %v1155_v10 = vadd.f32 %v1154_v39, %v1066_v5  ;;  %929 = vmatmul.bf16.gmra.mxu0 %v1697_v1  ;;  %v1974_v5 = vld [vmem:[%s2246_s27 + $0x1ac] sm:$0xf] }
  0xda   : > { %1018 = vmatmul.bf16.gmra.mxu1 %v1701_v2 }
  0xdb   : > { %v2021_v12 = vpack.c.bf16 %v1155_v10, %v1153_v53  ;;  %v1293_v13 = vadd.f32 %v1292_v55, %v1155_v10  ;;  %v1331_v14 = vmul.f32 %v1155_v10, %v1155_v10  ;;  %1107 = vmatmul.bf16.gmra.mxu2 %v1705_v8 }
  0xdc   : > { %1913 = vmatmul.msk.bf16.gmra.mxu3 %vm822_vm0, %v1725_v11 }
  0xdd   : > { %2093 = vst [vmem:[%s2251_s30 + $0x8] sm:$0xff] %v2021_v12   ;;  %v1362_v16 = vadd.f32 %v1361_v62, %v1331_v14  ;;  %v1736_v62 = vld [vmem:[%s2246_s27 + $0x188] sm:$0xf] }
  0xde   : > { %v1068_v17 = vpop.f32.mrf.mxu2  ;;  %v892_v19 = vpop.f32.mrf.mxu0  ;;  %v1737_v10 = vor.u32 %v1972_v63, %v1736_v62  ;;  %v1977_v62 = vld [vmem:[%s2246_s27 + $0x1c4] sm:$0xf]  ;;  %v1762_v63 = vld [vmem:[%s2246_s27 + $0x1d0] sm:$0xf0] }
  0xdf   : > { %v1069_v18 = vadd.f32 %v1068_v17, %v980_v15  ;;  %v981_v20 = vpop.f32.mrf.mxu1  ;;  %v1162_v21 = vpop.f32.mrf.mxu3 }
  0xe0   : > { %v982_v32 = vadd.f32 %v981_v20, %v892_v19 }
  0xe1   : > { %v1158_v22 = vadd.f32 %v1157_v52, %v1069_v18 }
  0xe3   : > { %v1294_v24 = vadd.f32 %v1293_v13, %v1158_v22  ;;  %v1332_v25 = vmul.f32 %v1158_v22, %v1158_v22  ;;  %v1757_v13 = vor.u32 %v1974_v5, %v1754_v6  ;;  %v1765_v6 = vor.u32 %v1977_v62, %v1762_v63 }
  0xe5   : > { %v1363_v31 = vadd.f32 %v1362_v16, %v1332_v25  ;;  %v1744_v25 = vld [vmem:[%s2246_s27 + $0x1a0] sm:$0xf] }
  0xe6   : > { %v1070_v33 = vpop.f32.mrf.mxu2  ;;  %v895_v39 = vpop.f32.mrf.mxu0  ;;  %v1745_v36 = vor.u32 %v1975_v28, %v1744_v25 }
  0xe7   : > { %v1071_v38 = vadd.f32 %v1070_v33, %v982_v32  ;;  %v984_v40 = vpop.f32.mrf.mxu1  ;;  %v1164_v42 = vpop.f32.mrf.mxu3  ;;  %v1976_v32 = vld [vmem:[%s2246_s27 + $0x1b4] sm:$0xf0] }
  0xe8   : > { %v985_v48 = vadd.f32 %v984_v40, %v895_v39  ;;  %v1770_v39 = vld [vmem:[%s2246_s27 + $0x1d8] sm:$0xf0] }
  0xe9   : > { %v1160_v43 = vadd.f32 %v1159_v9, %v1071_v38  ;;  %934 = vmatmul.bf16.gmra.mxu0 %v1713_v34  ;;  %v1978_v38 = vld [vmem:[%s2246_s27 + $0x1cc] sm:$0xf] }
  0xea   : > { %1023 = vmatmul.bf16.gmra.mxu1 %v1717_v35 }
  0xeb   : > { %v2026_v45 = vpack.c.bf16 %v1160_v43, %v1158_v22  ;;  %v1295_v46 = vadd.f32 %v1294_v24, %v1160_v43  ;;  %v1333_v47 = vmul.f32 %v1160_v43, %v1160_v43  ;;  %1112 = vmatmul.bf16.gmra.mxu2 %v1721_v41 }
  0xec   : > { %1914 = vmatmul.msk.bf16.gmra.mxu3 %vm822_vm0, %v1741_v44 }
  0xed   : > { %2094 = vst [vmem:[%s2251_s30 + $0x10] sm:$0xff] %v2026_v45   ;;  %v1364_v49 = vadd.f32 %v1363_v31, %v1333_v47  ;;  %v1752_v31 = vld [vmem:[%s2246_s27 + $0x1a8] sm:$0xf] }
  0xee   : > { %v1073_v50 = vpop.f32.mrf.mxu2  ;;  %v897_v52 = vpop.f32.mrf.mxu0  ;;  %v1753_v43 = vor.u32 %v1976_v32, %v1752_v31  ;;  %v1981_v31 = vld [vmem:[%s2246_s27 + $0x1e4] sm:$0xf]  ;;  %v1778_v32 = vld [vmem:[%s2246_s27 + $0x1f0] sm:$0xf0] }
  0xef   : > { %v1074_v51 = vadd.f32 %v1073_v50, %v985_v48  ;;  %v986_v53 = vpop.f32.mrf.mxu1  ;;  %v1167_v54 = vpop.f32.mrf.mxu3 }
  0xf0   : > { %v987_v1 = vadd.f32 %v986_v53, %v897_v52 }
  0xf1   : > { %v1163_v55 = vadd.f32 %v1162_v21, %v1074_v51 }
  0xf3   : > { %v1296_v57 = vadd.f32 %v1295_v46, %v1163_v55  ;;  %v1334_v58 = vmul.f32 %v1163_v55, %v1163_v55  ;;  %v1773_v46 = vor.u32 %v1978_v38, %v1770_v39  ;;  %v1781_v39 = vor.u32 %v1981_v31, %v1778_v32 }
  0xf5   : > { %v1365_v0 = vadd.f32 %v1364_v49, %v1334_v58  ;;  %v1760_v58 = vld [vmem:[%s2246_s27 + $0x1c0] sm:$0xf] }
  0xf6   : > { %v1075_v2 = vpop.f32.mrf.mxu2  ;;  %v900_v8 = vpop.f32.mrf.mxu0  ;;  %v1761_v5 = vor.u32 %v1979_v61, %v1760_v58 }
  0xf7   : > { %v1076_v7 = vadd.f32 %v1075_v2, %v987_v1  ;;  %v989_v9 = vpop.f32.mrf.mxu1  ;;  %v1169_v11 = vpop.f32.mrf.mxu3  ;;  %v1980_v1 = vld [vmem:[%s2246_s27 + $0x1d4] sm:$0xf0] }
  0xf8   : > { %v990_v17 = vadd.f32 %v989_v9, %v900_v8  ;;  %v1786_v8 = vld [vmem:[%s2246_s27 + $0x1f8] sm:$0xf0] }
  0xf9   : > { %v1165_v12 = vadd.f32 %v1164_v42, %v1076_v7  ;;  %939 = vmatmul.bf16.gmra.mxu0 %v1729_v3  ;;  %v1982_v7 = vld [vmem:[%s2246_s27 + $0x1ec] sm:$0xf] }
  0xfa   : > { %1028 = vmatmul.bf16.gmra.mxu1 %v1733_v4 }
  0xfb   : > { %v2031_v14 = vpack.c.bf16 %v1165_v12, %v1163_v55  ;;  %v1297_v15 = vadd.f32 %v1296_v57, %v1165_v12  ;;  %v1335_v16 = vmul.f32 %v1165_v12, %v1165_v12  ;;  %1117 = vmatmul.bf16.gmra.mxu2 %v1737_v10 }
  0xfc   : > { %1915 = vmatmul.msk.bf16.gmra.mxu3 %vm822_vm0, %v1757_v13 }
  0xfd   : > { %2095 = vst [vmem:[%s2251_s30 + $0x18] sm:$0xff] %v2031_v14   ;;  %v1366_v18 = vadd.f32 %v1365_v0, %v1335_v16  ;;  %v1768_v0 = vld [vmem:[%s2246_s27 + $0x1c8] sm:$0xf] }
  0xfe   : > { %v1078_v19 = vpop.f32.mrf.mxu2  ;;  %v902_v21 = vpop.f32.mrf.mxu0  ;;  %v1769_v12 = vor.u32 %v1980_v1, %v1768_v0 }
  0xff   : > { %v1079_v20 = vadd.f32 %v1078_v19, %v990_v17  ;;  %v991_v22 = vpop.f32.mrf.mxu1  ;;  %v1172_v23 = vpop.f32.mrf.mxu3 }
 0x100   : > { %v992_v34 = vadd.f32 %v991_v22, %v902_v21 }
 0x101   : > { %v1168_v24 = vadd.f32 %v1167_v54, %v1079_v20 }
 0x103   : > { %v1298_v26 = vadd.f32 %v1297_v15, %v1168_v24  ;;  %v1336_v27 = vmul.f32 %v1168_v24, %v1168_v24  ;;  %v1789_v15 = vor.u32 %v1982_v7, %v1786_v8 }
 0x105   : > { %v1367_v33 = vadd.f32 %v1366_v18, %v1336_v27  ;;  %v1776_v27 = vld [vmem:[%s2246_s27 + $0x1e0] sm:$0xf] }
 0x106   : > { %v1080_v35 = vpop.f32.mrf.mxu2  ;;  %v905_v41 = vpop.f32.mrf.mxu0  ;;  %v1777_v38 = vor.u32 %v1983_v30, %v1776_v27 }
 0x107   : > { %v1081_v40 = vadd.f32 %v1080_v35, %v992_v34  ;;  %v994_v42 = vpop.f32.mrf.mxu1  ;;  %v1174_v44 = vpop.f32.mrf.mxu3  ;;  %v1984_v34 = vld [vmem:[%s2246_s27 + $0x1f4] sm:$0xf0] }
 0x108   : > { %v995_v50 = vadd.f32 %v994_v42, %v905_v41 }
 0x109   : > { %v1170_v45 = vadd.f32 %v1169_v11, %v1081_v40  ;;  %944 = vmatmul.bf16.gmra.mxu0 %v1745_v36 }
 0x10a   : > { %1033 = vmatmul.bf16.gmra.mxu1 %v1749_v37 }
 0x10b   : > { %v2036_v47 = vpack.c.bf16 %v1170_v45, %v1168_v24  ;;  %v1299_v48 = vadd.f32 %v1298_v26, %v1170_v45  ;;  %v1337_v49 = vmul.f32 %v1170_v45, %v1170_v45  ;;  %1122 = vmatmul.bf16.gmra.mxu2 %v1753_v43 }
 0x10c   : > { %1916 = vmatmul.msk.bf16.gmra.mxu3 %vm822_vm0, %v1773_v46 }
 0x10d   : > { %2096 = vst [vmem:[%s2251_s30 + $0x20] sm:$0xff] %v2036_v47   ;;  %v1368_v51 = vadd.f32 %v1367_v33, %v1337_v49  ;;  %v1784_v33 = vld [vmem:[%s2246_s27 + $0x1e8] sm:$0xf] }
 0x10e   : > { %v1083_v52 = vpop.f32.mrf.mxu2  ;;  %v907_v54 = vpop.f32.mrf.mxu0  ;;  %v1785_v43 = vor.u32 %v1984_v34, %v1784_v33 }
 0x10f   : > { %v1084_v53 = vadd.f32 %v1083_v52, %v995_v50  ;;  %v996_v55 = vpop.f32.mrf.mxu1  ;;  %v1177_v56 = vpop.f32.mrf.mxu3 }
 0x110   : > { %v997_v3 = vadd.f32 %v996_v55, %v907_v54 }
 0x111   : > { %v1173_v57 = vadd.f32 %v1172_v23, %v1084_v53 }
 0x113   : > { %v1300_v59 = vadd.f32 %v1299_v48, %v1173_v57  ;;  %v1338_v60 = vmul.f32 %v1173_v57, %v1173_v57 }
 0x115   : > { %v1369_v2 = vadd.f32 %v1368_v51, %v1338_v60 }
 0x116   : > { %v1085_v4 = vpop.f32.mrf.mxu2  ;;  %v910_v10 = vpop.f32.mrf.mxu0 }
 0x117   : > { %v1086_v9 = vadd.f32 %v1085_v4, %v997_v3  ;;  %v999_v11 = vpop.f32.mrf.mxu1  ;;  %v1179_v13 = vpop.f32.mrf.mxu3 }
 0x118   : > { %v1000_v19 = vadd.f32 %v999_v11, %v910_v10 }
 0x119   : > { %v1175_v14 = vadd.f32 %v1174_v44, %v1086_v9  ;;  %949 = vmatmul.bf16.gmra.mxu0 %v1761_v5 }
 0x11a   : > { %1038 = vmatmul.bf16.gmra.mxu1 %v1765_v6 }
 0x11b   : > { %v2041_v16 = vpack.c.bf16 %v1175_v14, %v1173_v57  ;;  %v1301_v17 = vadd.f32 %v1300_v59, %v1175_v14  ;;  %v1339_v18 = vmul.f32 %v1175_v14, %v1175_v14  ;;  %1127 = vmatmul.bf16.gmra.mxu2 %v1769_v12 }
 0x11c   : > { %1917 = vmatmul.msk.bf16.gmra.mxu3 %vm822_vm0, %v1789_v15 }
 0x11d   : > { %2097 = vst [vmem:[%s2251_s30 + $0x28] sm:$0xff] %v2041_v16   ;;  %v1370_v20 = vadd.f32 %v1369_v2, %v1339_v18 }
 0x11e   : > { %v1088_v21 = vpop.f32.mrf.mxu2  ;;  %v912_v23 = vpop.f32.mrf.mxu0 }
 0x11f   : > { %v1089_v22 = vadd.f32 %v1088_v21, %v1000_v19  ;;  %v1001_v24 = vpop.f32.mrf.mxu1  ;;  %v1182_v25 = vpop.f32.mrf.mxu3 }
 0x120   : > { %v1002_v36 = vadd.f32 %v1001_v24, %v912_v23 }
 0x121   : > { %v1178_v26 = vadd.f32 %v1177_v56, %v1089_v22 }
 0x123   : > { %v1302_v28 = vadd.f32 %v1301_v17, %v1178_v26  ;;  %v1340_v29 = vmul.f32 %v1178_v26, %v1178_v26 }
 0x125   : > { %v1371_v35 = vadd.f32 %v1370_v20, %v1340_v29 }
 0x126   : > { %v1090_v37 = vpop.f32.mrf.mxu2  ;;  %v915_v41 = vpop.f32.mrf.mxu0 }
 0x127   : > { %v1091_v40 = vadd.f32 %v1090_v37, %v1002_v36  ;;  %v1004_v42 = vpop.f32.mrf.mxu1  ;;  %v1184_v44 = vpop.f32.mrf.mxu3 }
 0x128   : > { %v1005_v49 = vadd.f32 %v1004_v42, %v915_v41 }
 0x129   : > { %v1180_v45 = vadd.f32 %v1179_v13, %v1091_v40  ;;  %954 = vmatmul.bf16.gmra.mxu0 %v1777_v38 }
 0x12a   : > { %1043 = vmatmul.bf16.gmra.mxu1 %v1781_v39 }
 0x12b   : > { %v2046_v46 = vpack.c.bf16 %v1180_v45, %v1178_v26  ;;  %v1303_v47 = vadd.f32 %v1302_v28, %v1180_v45  ;;  %v1341_v48 = vmul.f32 %v1180_v45, %v1180_v45  ;;  %1132 = vmatmul.bf16.gmra.mxu2 %v1785_v43 }
 0x12d   : > { %2098 = vst [vmem:[%s2251_s30 + $0x30] sm:$0xff] %v2046_v46   ;;  %v1372_v50 = vadd.f32 %v1371_v35, %v1341_v48 }
 0x12e   : > { %v1093_v51 = vpop.f32.mrf.mxu2  ;;  %v917_v53 = vpop.f32.mrf.mxu0 }
 0x12f   : > { %v1094_v52 = vadd.f32 %v1093_v51, %v1005_v49  ;;  %v1006_v54 = vpop.f32.mrf.mxu1  ;;  %v1187_v55 = vpop.f32.mrf.mxu3 }
 0x130   : > { %v1007_v60 = vadd.f32 %v1006_v54, %v917_v53 }
 0x131   : > { %v1183_v56 = vadd.f32 %v1182_v25, %v1094_v52 }
 0x133   : > { %v1304_v57 = vadd.f32 %v1303_v47, %v1183_v56  ;;  %v1342_v58 = vmul.f32 %v1183_v56, %v1183_v56 }
 0x135   : > { %v1373_v59 = vadd.f32 %v1372_v50, %v1342_v58 }
 0x136   : > { %v1095_v61 = vpop.f32.mrf.mxu2  ;;  %v920_v63 = vpop.f32.mrf.mxu0 }
 0x137   : > { %v1096_v62 = vadd.f32 %v1095_v61, %v1007_v60  ;;  %v1009_v0 = vpop.f32.mrf.mxu1  ;;  %v1189_v1 = vpop.f32.mrf.mxu3 }
 0x138   : > { %v1010_v6 = vadd.f32 %v1009_v0, %v920_v63 }
 0x139   : > { %v1185_v2 = vadd.f32 %v1184_v44, %v1096_v62 }
 0x13b   : > { %v2051_v3 = vpack.c.bf16 %v1185_v2, %v1183_v56  ;;  %v1305_v4 = vadd.f32 %v1304_v57, %v1185_v2  ;;  %v1343_v5 = vmul.f32 %v1185_v2, %v1185_v2 }
 0x13d   : > { %2099 = vst [vmem:[%s2251_s30 + $0x38] sm:$0xff] %v2051_v3   ;;  %v1374_v7 = vadd.f32 %v1373_v59, %v1343_v5 }
 0x13e   : > { %v1098_v8 = vpop.f32.mrf.mxu2  ;;  %v922_v10 = vpop.f32.mrf.mxu0 }
 0x13f   : > { %v1099_v9 = vadd.f32 %v1098_v8, %v1010_v6  ;;  %v1011_v11 = vpop.f32.mrf.mxu1  ;;  %v1192_v12 = vpop.f32.mrf.mxu3 }
 0x140   : > { %v1012_v17 = vadd.f32 %v1011_v11, %v922_v10 }
 0x141   : > { %v1188_v13 = vadd.f32 %v1187_v55, %v1099_v9 }
 0x143   : > { %v1306_v14 = vadd.f32 %v1305_v4, %v1188_v13  ;;  %v1344_v15 = vmul.f32 %v1188_v13, %v1188_v13 }
 0x145   : > { %v1375_v16 = vadd.f32 %v1374_v7, %v1344_v15 }
 0x146   : > { %v1100_v18 = vpop.f32.mrf.mxu2  ;;  %v925_v20 = vpop.f32.mrf.mxu0 }
 0x147   : > { %v1101_v19 = vadd.f32 %v1100_v18, %v1012_v17  ;;  %v1014_v21 = vpop.f32.mrf.mxu1  ;;  %v1194_v22 = vpop.f32.mrf.mxu3 }
 0x148   : > { %v1015_v27 = vadd.f32 %v1014_v21, %v925_v20 }
 0x149   : > { %v1190_v23 = vadd.f32 %v1189_v1, %v1101_v19 }
 0x14b   : > { %v2056_v24 = vpack.c.bf16 %v1190_v23, %v1188_v13  ;;  %v1307_v25 = vadd.f32 %v1306_v14, %v1190_v23  ;;  %v1345_v26 = vmul.f32 %v1190_v23, %v1190_v23 }
 0x14d   : > { %2100 = vst [vmem:[%s2251_s30 + $0x40] sm:$0xff] %v2056_v24   ;;  %v1376_v28 = vadd.f32 %v1375_v16, %v1345_v26 }
 0x14e   : > { %v1103_v29 = vpop.f32.mrf.mxu2  ;;  %v927_v31 = vpop.f32.mrf.mxu0 }
 0x14f   : > { %v1104_v30 = vadd.f32 %v1103_v29, %v1015_v27  ;;  %v1016_v32 = vpop.f32.mrf.mxu1  ;;  %v1197_v33 = vpop.f32.mrf.mxu3 }
 0x150   : > { %v1017_v38 = vadd.f32 %v1016_v32, %v927_v31 }
 0x151   : > { %v1193_v34 = vadd.f32 %v1192_v12, %v1104_v30 }
 0x153   : > { %v1308_v35 = vadd.f32 %v1307_v25, %v1193_v34  ;;  %v1346_v36 = vmul.f32 %v1193_v34, %v1193_v34 }
 0x155   : > { %v1377_v37 = vadd.f32 %v1376_v28, %v1346_v36 }
 0x156   : > { %v1105_v39 = vpop.f32.mrf.mxu2  ;;  %v930_v41 = vpop.f32.mrf.mxu0 }
 0x157   : > { %v1106_v40 = vadd.f32 %v1105_v39, %v1017_v38  ;;  %v1019_v42 = vpop.f32.mrf.mxu1  ;;  %v1199_v43 = vpop.f32.mrf.mxu3 }
 0x158   : > { %v1020_v53 = vadd.f32 %v1019_v42, %v930_v41 }
 0x159   : > { %v1195_v44 = vadd.f32 %v1194_v22, %v1106_v40 }
 0x15b   : > { %v2061_v45 = vpack.c.bf16 %v1195_v44, %v1193_v34  ;;  %v2497_v46 = vadd.f32 %v1308_v35, %v1195_v44  ;;  %v1347_v47 = vmul.f32 %v1195_v44, %v1195_v44 }
 0x15d   : > { %2101 = vst [vmem:[%s2251_s30 + $0x48] sm:$0xff] %v2061_v45   ;;  %v2500_v48 = vadd.f32 %v1377_v37, %v1347_v47 }
 0x15e   : > { %v1108_v49 = vpop.f32.mrf.mxu2  ;;  %v932_v50 = vpop.f32.mrf.mxu0 }
 0x15f   : > { %v1021_v51 = vpop.f32.mrf.mxu1  ;;  %v1202_v52 = vpop.f32.mrf.mxu3  ;;  %v1109_v54 = vadd.f32 %v1108_v49, %v1020_v53 }
 0x160   : > { %v1022_v55 = vadd.f32 %v1021_v51, %v932_v50 }
 0x161   : > { %v1198_v61 = vadd.f32 %v1197_v33, %v1109_v54 }
 0x163   : > { %v1348_v50 = vmul.f32 %v1198_v61, %v1198_v61  ;;  %v1310_v53 = vadd.f32 %v2497_v46, %v1198_v61 }
 0x166   : > { %v1110_v56 = vpop.f32.mrf.mxu2  ;;  %v935_v58 = vpop.f32.mrf.mxu0 }
 0x167   : > { %v1111_v57 = vadd.f32 %v1110_v56, %v1022_v55  ;;  %v1024_v59 = vpop.f32.mrf.mxu1  ;;  %v1204_v60 = vpop.f32.mrf.mxu3  ;;  %v1379_v56 = vadd.f32 %v2500_v48, %v1348_v50 }
 0x168   : > { %v1025_v3 = vadd.f32 %v1024_v59, %v935_v58 }
 0x169   : > { %v2502_v62 = vadd.f32 %v1199_v43, %v1111_v57 }
 0x16b   : > { %v2066_v63 = vpack.c.bf16 %v2502_v62, %v1198_v61  ;;  %v1349_v51 = vmul.f32 %v2502_v62, %v2502_v62  ;;  %v1311_v59 = vadd.f32 %v1310_v53, %v2502_v62 }
 0x16d   : > { %2102 = vst [vmem:[%s2251_s30 + $0x50] sm:$0xff] %v2066_v63   ;;  %v1380_v63 = vadd.f32 %v1379_v56, %v1349_v51 }
 0x16e   : > { %v1113_v0 = vpop.f32.mrf.mxu2  ;;  %v937_v1 = vpop.f32.mrf.mxu0 }
 0x16f   : > { %v1026_v2 = vpop.f32.mrf.mxu1  ;;  %v1207_v4 = vpop.f32.mrf.mxu3  ;;  %v1114_v5 = vadd.f32 %v1113_v0, %v1025_v3 }
 0x170   : > { %v1027_v6 = vadd.f32 %v1026_v2, %v937_v1 }
 0x171   : > { %v1203_v11 = vadd.f32 %v1202_v52, %v1114_v5 }
 0x173   : > { %v1350_v57 = vmul.f32 %v1203_v11, %v1203_v11  ;;  %v1312_v2 = vadd.f32 %v1311_v59, %v1203_v11 }
 0x176   : > { %v1115_v7 = vpop.f32.mrf.mxu2  ;;  %v940_v9 = vpop.f32.mrf.mxu0 }
 0x177   : > { %v1116_v8 = vadd.f32 %v1115_v7, %v1027_v6  ;;  %v1029_v10 = vpop.f32.mrf.mxu1  ;;  %v1209_v14 = vpop.f32.mrf.mxu3  ;;  %v1381_v6 = vadd.f32 %v1380_v63, %v1350_v57  ;;  %v1408_v63 = vld [vmem:[%s2256_s6] sm:$0xff] }
 0x178   : > { %v1030_v18 = vadd.f32 %v1029_v10, %v940_v9 }
 0x179   : > { %v1205_v12 = vadd.f32 %v1204_v60, %v1116_v8 }
 0x17b   : > { %v2071_v13 = vpack.c.bf16 %v1205_v12, %v1203_v11  ;;  %v1351_v3 = vmul.f32 %v1205_v12, %v1205_v12  ;;  %v1313_v7 = vadd.f32 %v1312_v2, %v1205_v12 }
 0x17d   : > { %2103 = vst [vmem:[%s2251_s30 + $0x58] sm:$0xff] %v2071_v13   ;;  %v1382_v9 = vadd.f32 %v1381_v6, %v1351_v3 }
 0x17e   : > { %v1118_v15 = vpop.f32.mrf.mxu2  ;;  %v942_v16 = vpop.f32.mrf.mxu0 }
 0x17f   : > { %v1031_v17 = vpop.f32.mrf.mxu1  ;;  %v1119_v19 = vadd.f32 %v1118_v15, %v1030_v18  ;;  %v1212_v22 = vpop.f32.mrf.mxu3 }
 0x180   : > { %v1032_v20 = vadd.f32 %v1031_v17, %v942_v16 }
 0x181   : > { %v1208_v26 = vadd.f32 %v1207_v4, %v1119_v19 }
 0x183   : > { %v1352_v46 = vmul.f32 %v1208_v26, %v1208_v26  ;;  %v1314_v48 = vadd.f32 %v1313_v7, %v1208_v26 }
 0x186   : > { %v1120_v21 = vpop.f32.mrf.mxu2  ;;  %v945_v24 = vpop.f32.mrf.mxu0 }
 0x187   : > { %v1121_v23 = vadd.f32 %v1120_v21, %v1032_v20  ;;  %v1034_v25 = vpop.f32.mrf.mxu1  ;;  %v1214_v32 = vpop.f32.mrf.mxu3 }
 0x188   : > { %v1035_v33 = vadd.f32 %v1034_v25, %v945_v24 }
 0x189   : > { %v1210_v27 = vadd.f32 %v1209_v14, %v1121_v23  ;;  %v1383_v14 = vadd.f32 %v1382_v9, %v1352_v46 }
 0x18b   : > { %v2076_v28 = vpack.c.bf16 %v1210_v27, %v1208_v26  ;;  %v1353_v10 = vmul.f32 %v1210_v27, %v1210_v27  ;;  %v1315_v15 = vadd.f32 %v1314_v48, %v1210_v27 }
 0x18d   : > { %2104 = vst [vmem:[%s2251_s30 + $0x60] sm:$0xff] %v2076_v28   ;;  %v1384_v18 = vadd.f32 %v1383_v14, %v1353_v10 }
 0x18e   : > { %v1123_v29 = vpop.f32.mrf.mxu2  ;;  %v947_v30 = vpop.f32.mrf.mxu0 }
 0x18f   : > { %v1036_v31 = vpop.f32.mrf.mxu1  ;;  %v1124_v34 = vadd.f32 %v1123_v29, %v1035_v33  ;;  %v1217_v42 = vpop.f32.mrf.mxu3 }
 0x190   : > { %v1037_v35 = vadd.f32 %v1036_v31, %v947_v30 }
 0x191   : > { %v1213_v40 = vadd.f32 %v1212_v22, %v1124_v34 }
 0x193   : > { %v1354_v16 = vmul.f32 %v1213_v40, %v1213_v40  ;;  %v1316_v11 = vadd.f32 %v1315_v15, %v1213_v40 }
 0x195   : > { %v1385_v22 = vadd.f32 %v1384_v18, %v1354_v16 }
 0x196   : > { %v1125_v36 = vpop.f32.mrf.mxu2  ;;  %v950_v38 = vpop.f32.mrf.mxu0 }
 0x197   : > { %v1126_v37 = vadd.f32 %v1125_v36, %v1037_v35  ;;  %v1039_v39 = vpop.f32.mrf.mxu1  ;;  %v1219_v52 = vpop.f32.mrf.mxu3 }
 0x198   : > { %v1040_v49 = vadd.f32 %v1039_v39, %v950_v38 }
 0x199   : > { %v1215_v41 = vadd.f32 %v1214_v32, %v1126_v37 }
 0x19b   : > { %v2081_v43 = vpack.c.bf16 %v1215_v41, %v1213_v40  ;;  %v1355_v19 = vmul.f32 %v1215_v41, %v1215_v41  ;;  %v1317_v12 = vadd.f32 %v1316_v11, %v1215_v41 }
 0x19d   : > { %2105 = vst [vmem:[%s2251_s30 + $0x68] sm:$0xff] %v2081_v43   ;;  %v1386_v25 = vadd.f32 %v1385_v22, %v1355_v19 }
 0x19e   : > { %v1128_v44 = vpop.f32.mrf.mxu2  ;;  %v952_v45 = vpop.f32.mrf.mxu0 }
 0x19f   : > { %v1041_v47 = vpop.f32.mrf.mxu1  ;;  %v1129_v54 = vadd.f32 %v1128_v44, %v1040_v49  ;;  %v1222_v13 = vpop.f32.mrf.mxu3 }
 0x1a0   : > { %v1042_v55 = vadd.f32 %v1041_v47, %v952_v45  ;;  %v1397_v47 = vlaneseq }
 0x1a1   : > { %v1218_v4 = vadd.f32 %v1217_v42, %v1129_v54 }
 0x1a2   : > { %v1398_v53 = vshrl.u32 %v1397_v47, 7 }
 0x1a3   : > { %v1356_v23 = vmul.f32 %v1218_v4, %v1218_v4  ;;  %v1318_v28 = vadd.f32 %v1317_v12, %v1218_v4 }
 0x1a4   : > { %vm1399_vm1 = vcmp.eq.s32.totalorder %v1398_v53, 0  ;;  %vm1403_vm2 = vcmp.eq.s32.totalorder %v1398_v53, 1 }
 0x1a5   : > { %v1387_v31 = vadd.f32 %v1386_v25, %v1356_v23 }
 0x1a6   : > { %v1130_v58 = vpop.f32.mrf.mxu2  ;;  %v955_v0 = vpop.f32.mrf.mxu0 }
 0x1a7   : > { %v1131_v60 = vadd.f32 %v1130_v58, %v1042_v55  ;;  %v1044_v1 = vpop.f32.mrf.mxu1  ;;  %v1224_v34 = vpop.f32.mrf.mxu3 }
 0x1a8   : > { %v1045_v8 = vadd.f32 %v1044_v1, %v955_v0 }
 0x1a9   : > { %v1220_v5 = vadd.f32 %v1219_v52, %v1131_v60 }
 0x1ab   : > { %v2086_v61 = vpack.c.bf16 %v1220_v5, %v1218_v4  ;;  %v1357_v26 = vmul.f32 %v1220_v5, %v1220_v5  ;;  %v1319_v32 = vadd.f32 %v1318_v28, %v1220_v5 }
 0x1ad   : > { %2106 = vst [vmem:[%s2251_s30 + $0x70] sm:$0xff] %v2086_v61   ;;  %v1388_v35 = vadd.f32 %v1387_v31, %v1357_v26 }
 0x1ae   : > { %v1133_v62 = vpop.f32.mrf.mxu2  ;;  %v957_v20 = vpop.f32.mrf.mxu0 }
 0x1af   : > { %v1134_v17 = vadd.f32 %v1133_v62, %v1045_v8  ;;  %v1046_v21 = vpop.f32.mrf.mxu1 }
 0x1b0   : > { %v1047_v29 = vadd.f32 %v1046_v21, %v957_v20 }
 0x1b1   : > { %v1223_v24 = vadd.f32 %v1222_v13, %v1134_v17 }
 0x1b3   : > { %v1358_v27 = vmul.f32 %v1223_v24, %v1223_v24  ;;  %v1320_v36 = vadd.f32 %v1319_v32, %v1223_v24 }
 0x1b5   : > { %v1389_v38 = vadd.f32 %v1388_v35, %v1358_v27 }
 0x1b6   : > { %v1135_v30 = vpop.f32.mrf.mxu2 }
 0x1b7   : > { %v1136_v33 = vadd.f32 %v1135_v30, %v1047_v29 }
 0x1b9   : > { %v1225_v37 = vadd.f32 %v1224_v34, %v1136_v33 }
 0x1bb   : > { %v2091_v39 = vpack.c.bf16 %v1225_v37, %v1223_v24  ;;  %v1321_v40 = vadd.f32 %v1320_v36, %v1225_v37  ;;  %v1359_v41 = vmul.f32 %v1225_v37, %v1225_v37 }
 0x1bd   : > { %2107 = vst [vmem:[%s2251_s30 + $0x78] sm:$0xff] %v2091_v39   ;;  %v1322_v42 = vrot.slane %v1321_v40, 4  ;;  %v1390_v43 = vadd.f32 %v1389_v38, %v1359_v41 }
 0x1bf   : > { %v1323_v44 = vadd.f32 %v1322_v42, %v1321_v40  ;;  %v1391_v45 = vrot.slane %v1390_v43, 4 }
 0x1c1   : > { %v1324_v49 = vrot.slane %v1323_v44, 2  ;;  %v1392_v50 = vadd.f32 %v1391_v45, %v1390_v43 }
 0x1c3   : > { %v1325_v51 = vadd.f32 %v1324_v49, %v1323_v44  ;;  %v1393_v52 = vrot.slane %v1392_v50, 2 }
 0x1c5   : > { %v1326_v54 = vrot.slane %v1325_v51, 1  ;;  %v1394_v55 = vadd.f32 %v1393_v52, %v1392_v50 }
 0x1c7   : > { %v1327_v56 = vadd.f32 %v1326_v54, %v1325_v51  ;;  %v1395_v57 = vrot.slane %v1394_v55, 1 }
 0x1c9   : > { %v1396_v58 = vadd.f32 %v1395_v57, %v1394_v55  ;;  %v1402_v59 = vsel %vm1399_vm1, %v1327_v56, 0.0 }
 0x1cb   : > { %v1406_v60 = vsel %vm1403_vm2, %v1396_v58, 0.0 }
 0x1cc   : > { %v1407_v0 = vadd.f32 %v1406_v60, %v1402_v59 }
 0x1ce   : > { %v1409_v1 = vadd.f32 %v1408_v63, %v1407_v0 }
 0x1d0   : > { %1410 = vst [vmem:[%s2256_s6] sm:$0xff] %v1409_v1 }
 0x1d1 PF: > { %s14_s16 = sadd.s32 1, %s2187_s16   ;;  %s2537_s12 = smov %s2179_s14 }
 0x1d2   : > { %p11_p8 = scmp.ge.s32.totalorder %s14_s16, 6   ;;  %s2538_s13 = smov %s2183_s15 }
 0x1d3   : > { %s2539_s14 = smov %s2542_s17  ;;  %s2540_s15 = smov %s2546_s18 }
 0x1d4   :  { %13 = sbr.rel (!%p11_p8) target bundleno = 3 (0x3), region = 74 }

</bundles_post_ra>
